<compile_context>
chip_gen: v7x
topology: tpu7x:2x2x1
jax: 0.10.0
libtpu: 0.0.40
codegen_flags: <defaults>
</compile_context>

<pallas_src>
import jax
import jax.numpy as jnp
from jax.experimental import pallas as pl
from jax.experimental.pallas import tpu as pltpu

# ----------------------------- configuration --------------------------------
IMG_H, IMG_W = 16, 16
PATCH = (2, 4, 4)                 # (pZ, pH, pW)
EMBED_DIM = 16
SURFACE_CH = 4
UPPER_CH = 2
SCALAR_CH = 2
UPPER_LEVELS = 4                  # imgZ
OUT_CH = 1
_EPS = 1e-5                       # nn.LayerNorm default eps

# derived patch grid (as in SwinUnet.__init__)
_Zp = UPPER_LEVELS // PATCH[0]    # 2 upper z-slices after patching
_Hp = IMG_H // PATCH[1]           # 4
_Wp = IMG_W // PATCH[2]           # 4
_Z = _Zp + 1                      # 3 (surface slice appended last)
_H2, _W2 = _Hp // 2, _Wp // 2     # 2, 2

# kernel layout: rows = (z, b, h2) ; lanes = (w2, hh, ww, feature)
_LANES = 128                                                  # 8 groups x embed_dim
_NG = 2 * 2 * 2                                               # (w2, hh, ww) groups per row
_UP_FEAT = UPPER_CH * PATCH[0] * PATCH[1] * PATCH[2]          # 64
_SF_FEAT = (SURFACE_CH + SCALAR_CH) * PATCH[1] * PATCH[2]     # 96
_UP_LANES = _NG * _UP_FEAT                                    # 512
_SF_LANES = _NG * _SF_FEAT                                    # 768
_PATCH_LANES = _UP_LANES + _SF_LANES                          # 1280

# row offsets of the individual weights inside the single weight slab
_OFF_EMB = 0
_OFF_SEG64 = _OFF_EMB + _PATCH_LANES          # 1280: per-w2 64-lane LN averaging matrix
_OFF_RU = _OFF_SEG64 + _LANES                 # 1408: fused reduction @ linear1
_OFF_SEG16 = _OFF_RU + _LANES                 # 1536: per-pixel 16-lane LN averaging matrix
_OFF_UP2 = _OFF_SEG16 + _LANES                # 1664: UpSample.linear2
_OFF_REC = _OFF_UP2 + _LANES                  # 1792: PatchRecovery (skip half ; up half)
_W_ROWS = _OFF_REC + 2 * _LANES               # 2048


# ------------------------------- fused kernel --------------------------------
def _swin_unet_fused_kernel(p_ref, w_ref, v_ref, out_ref):
    """Whole SwinUnet forward on VMEM-resident data.

    p_ref : (rows, 1280) merged patch matrix, rows = upper (zp,b,h2) then surface (b,h2)
    w_ref : (2048, 128)  all GEMM weights stacked along sublanes
    v_ref : (7, 128)     bias / LayerNorm gamma-beta row vectors
    out   : (surface_rows, 128) lanes = (w2, hh, ww, oc, kh, kw)
    """
    f32 = jnp.float32
    n_rows = p_ref.shape[0]
    n_sf = out_ref.shape[0]
    n_up = n_rows - n_sf

    vecs = v_ref[...]                                      # (7, 128) -> ~1 vreg
    b_emb_up, b_emb_sf = vecs[0:1, :], vecs[1:2, :]
    dn_g, dn_b = vecs[2:3, :], vecs[3:4, :]
    up_g, up_b = vecs[4:5, :], vecs[5:6, :]
    b_de = vecs[6:7, :]

    # ---- PatchEmbedding: upper + surface in ONE block-diagonal GEMM ----------
    is_sf = jax.lax.broadcasted_iota(jnp.int32, (n_rows, _LANES), 0) >= n_up
    x = (jnp.dot(p_ref[...], w_ref[_OFF_EMB:_OFF_SEG64, :], preferred_element_type=f32)
         + jnp.where(is_sf, b_emb_sf, b_emb_up))           # (rows, 128)

    # TODO(synk): SwinTransformerLayer not provided -> layers[0..3] are identity.
    skip_s = x[n_up:n_rows, :]                             # surface-z skip connection

    # ---- DownSample: LayerNorm(4*dim) per 64-lane segment + reduction --------
    seg64 = w_ref[_OFF_SEG64:_OFF_RU, :]
    mu = jnp.dot(x, seg64, preferred_element_type=f32)     # per-segment mean (MXU)
    xc = x - mu
    var = jnp.dot(xc * xc, seg64, preferred_element_type=f32)
    xn = xc * jax.lax.rsqrt(var + _EPS) * dn_g + dn_b

    # reduction (4*dim->2*dim) folded with UpSample.linear1 (2*dim->4*dim).
    # NOTE: only numerically valid while layers[1..2] are identity; un-fuse otherwise.
    u = jnp.dot(xn, w_ref[_OFF_RU:_OFF_SEG16, :], preferred_element_type=f32)

    # ---- UpSample: per-pixel LayerNorm(dim) + linear2 -------------------------
    seg16 = w_ref[_OFF_SEG16:_OFF_UP2, :]
    mu_p = jnp.dot(u, seg16, preferred_element_type=f32)
    uc = u - mu_p
    var_p = jnp.dot(uc * uc, seg16, preferred_element_type=f32)
    un = uc * jax.lax.rsqrt(var_p + _EPS) * up_g + up_b
    u2 = jnp.dot(un, w_ref[_OFF_UP2:_OFF_REC, :], preferred_element_type=f32)

    # ---- skip concat + PatchRecovery (surface z only) + final ReLU -----------
    conc = jnp.concatenate([skip_s, u2[n_up:n_rows, :]], axis=-1)        # (n_sf, 256)
    rec = jnp.dot(conc, w_ref[_OFF_REC:_W_ROWS, :], preferred_element_type=f32) + b_de
    out_ref[...] = jnp.maximum(rec, 0.0)                   # SwinUnet's final nn.ReLU


def _fused_call(patches, w_all, vec_all, n_surface_rows):
    vmem = pltpu.MemorySpace.VMEM
    return pl.pallas_call(
        _swin_unet_fused_kernel,
        out_shape=jax.ShapeDtypeStruct((n_surface_rows, _LANES), jnp.float32),
        in_specs=[pl.BlockSpec(memory_space=vmem)] * 3,
        out_specs=pl.BlockSpec(memory_space=vmem),
    )(patches, w_all, vec_all)


# ------------------------------ parameter init -------------------------------
def init_params(key):
    """PyTorch-layout parameters (same shapes as the nn.Module)."""
    pZ, pH, pW = PATCH
    dim = EMBED_DIM
    in_surf = SURFACE_CH + SCALAR_CH
    ks = jax.random.split(key, 13)
    return {
        "conv_surface_w": 0.02 * jax.random.normal(ks[0], (dim, in_surf, pH, pW), jnp.float32),
        "conv_surface_b": 0.02 * jax.random.normal(ks[1], (dim,), jnp.float32),
        "conv_upper_w": 0.02 * jax.random.normal(ks[2], (dim, UPPER_CH, pZ, pH, pW), jnp.float32),
        "conv_upper_b": 0.02 * jax.random.normal(ks[3], (dim,), jnp.float32),
        "down_norm_g": jnp.ones((4 * dim,), jnp.float32)
        + 0.02 * jax.random.normal(ks[4], (4 * dim,), jnp.float32),
        "down_norm_b": 0.02 * jax.random.normal(ks[5], (4 * dim,), jnp.float32),
        "down_reduction_w": 0.02 * jax.random.normal(ks[6], (2 * dim, 4 * dim), jnp.float32),
        "up_linear1_w": 0.02 * jax.random.normal(ks[7], (4 * dim, 2 * dim), jnp.float32),
        "up_norm_g": jnp.ones((dim,), jnp.float32)
        + 0.02 * jax.random.normal(ks[8], (dim,), jnp.float32),
        "up_norm_b": 0.02 * jax.random.normal(ks[9], (dim,), jnp.float32),
        "up_linear2_w": 0.02 * jax.random.normal(ks[10], (dim, dim), jnp.float32),
        "deconv_w": 0.02 * jax.random.normal(ks[11], (2 * dim, OUT_CH, pH, pW), jnp.float32),
        "deconv_b": 0.02 * jax.random.normal(ks[12], (OUT_CH,), jnp.float32),
    }


def prepare_params(p):
    """One-time transform of PyTorch-layout weights into the two kernel slabs."""
    dim = EMBED_DIM
    pZ, pH, pW = PATCH
    eye_g = jnp.eye(_NG, dtype=jnp.float32)
    eye_2 = jnp.eye(2, dtype=jnp.float32)

    # conv kernels flattened to per-patch linear maps; the input flatten order
    # matches the wrapper's patch extraction ((c[,z],h,w) major-to-minor).
    w_u = p["conv_upper_w"].reshape(dim, _UP_FEAT).T              # (64, 16)
    w_s = p["conv_surface_w"].reshape(dim, _SF_FEAT).T            # (96, 16)
    w_de = p["deconv_w"].reshape(2 * dim, OUT_CH * pH * pW)       # (32, 16)

    w_embed = jnp.concatenate([jnp.kron(eye_g, w_u),
                               jnp.kron(eye_g, w_s)], axis=0)     # (1280, 128)
    seg64 = jnp.kron(eye_2, jnp.full((4 * dim, 4 * dim), 1.0 / (4 * dim), jnp.float32))
    # DownSample.reduction folded with UpSample.linear1 (identity layers in between).
    w_ru = jnp.matmul(p["down_reduction_w"].T, p["up_linear1_w"].T,
                      precision="highest")                        # (64, 64)
    w_ru_blk = jnp.kron(eye_2, w_ru)                              # (128, 128)
    seg16 = jnp.kron(eye_g, jnp.full((dim, dim), 1.0 / dim, jnp.float32))
    w_up2_blk = jnp.kron(eye_g, p["up_linear2_w"].T)              # (128, 128)
    w_rec = jnp.concatenate([jnp.kron(eye_g, w_de[:dim]),         # skip half
                             jnp.kron(eye_g, w_de[dim:])], axis=0)  # up half -> (256, 128)

    w_all = jnp.concatenate([w_embed, seg64, w_ru_blk, seg16, w_up2_blk, w_rec], axis=0)
    assert w_all.shape == (_W_ROWS, _LANES)

    vec_all = jnp.stack([
        jnp.tile(p["conv_upper_b"], _NG),                         # embedding bias (upper rows)
        jnp.tile(p["conv_surface_b"], _NG),                       # embedding bias (surface rows)
        jnp.tile(p["down_norm_g"], 2),                            # LayerNorm(4*dim) gamma
        jnp.tile(p["down_norm_b"], 2),                            # LayerNorm(4*dim) beta
        jnp.tile(p["up_norm_g"], _NG),                            # LayerNorm(dim) gamma
        jnp.tile(p["up_norm_b"], _NG),                            # LayerNorm(dim) beta
        jnp.tile(jnp.repeat(p["deconv_b"], pH * pW), _NG),        # deconv bias
    ], axis=0)                                                    # (7, 128)
    return {"w_all": w_all, "vec_all": vec_all}


# --------------------------------- forward -----------------------------------
def swin_unet_forward(kparams, input_surface, input_upper, input_scalar):
    B = input_surface.shape[0]
    pZ, pH, pW = PATCH
    H2, W2 = _H2, _W2
    Cin = SURFACE_CH + SCALAR_CH
    Cu = UPPER_CH

    # PatchEmbedding.forward: broadcast scalars to maps and concat channels
    scalar_map = jnp.broadcast_to(input_scalar[:, :, None, None],
                                  (B, SCALAR_CH, IMG_H, IMG_W))
    surf = jnp.concatenate([input_surface, scalar_map], axis=1)           # (B, 6, 16, 16)

    # surface patches: rows = (b, h2); lanes = (w2, hh, ww, cin, ph, pw)
    ps = (surf.reshape(B, Cin, H2, 2, pH, W2, 2, pW)
              .transpose(0, 2, 5, 3, 6, 1, 4, 7)
              .reshape(B * H2, _SF_LANES))                                # (4, 768)

    # upper patches: rows = (zp, b, h2); lanes = (w2, hh, ww, cu, pz, ph, pw)
    pu = (input_upper.reshape(B, Cu, _Zp, pZ, H2, 2, pH, W2, 2, pW)
                     .transpose(2, 0, 4, 7, 5, 8, 1, 3, 6, 9)
                     .reshape(_Zp * B * H2, _UP_LANES))                   # (8, 512)

    # zero-padded merge so upper + surface embedding becomes ONE block GEMM
    patches = jnp.concatenate(
        [jnp.pad(pu, ((0, 0), (0, _SF_LANES))),
         jnp.pad(ps, ((0, 0), (_UP_LANES, 0)))], axis=0)                  # (12, 1280)

    rec = _fused_call(patches, kparams["w_all"], kparams["vec_all"], B * H2)   # (4, 128)

    # un-patch: rec[b*H2+h2, (w2,hh,ww,oc,kh,kw)] -> img[b, oc, (2h2+hh)*pH+kh, (2w2+ww)*pW+kw]
    out = (rec.reshape(B, H2, 2, 2, 2, OUT_CH, pH, pW)
              .transpose(0, 5, 1, 3, 6, 2, 4, 7)
              .reshape(B, OUT_CH, IMG_H, IMG_W))
    return out


# ------------------------- plain-JAX reference forward ------------------------
def reference_forward(p, input_surface, input_upper, input_scalar):
    """Direct mirror of the PyTorch module (SwinTransformerLayer = identity)."""
    B = input_surface.shape[0]
    dim = EMBED_DIM
    Z, H, W = _Z, _Hp, _Wp

    scalar_map = jnp.broadcast_to(input_scalar[:, :, None, None],
                                  (B, SCALAR_CH, IMG_H, IMG_W))
    surf = jnp.concatenate([input_surface, scalar_map], axis=1)
    emb_s = jax.lax.conv_general_dilated(
        surf, p["conv_surface_w"], window_strides=PATCH[1:], padding="VALID",
        dimension_numbers=("NCHW", "OIHW", "NCHW"))
    emb_s = emb_s + p["conv_surface_b"][None, :, None, None]              # (B,16,4,4)
    emb_u = jax.lax.conv_general_dilated(
        input_upper, p["conv_upper_w"], window_strides=PATCH, padding="VALID",
        dimension_numbers=("NCDHW", "OIDHW", "NCDHW"))
    emb_u = emb_u + p["conv_upper_b"][None, :, None, None, None]          # (B,16,2,4,4)
    x = jnp.concatenate([emb_u, emb_s[:, :, None]], axis=2)               # (B,16,3,4,4)
    x = x.transpose(0, 2, 3, 4, 1).reshape(B, -1, dim)                    # (B,48,16)
    skip = x

    # DownSample
    x = (x.reshape(B, Z, H // 2, 2, W // 2, 2, dim)
          .transpose(0, 1, 2, 4, 3, 5, 6).reshape(B, -1, 4 * dim))
    mu = x.mean(-1, keepdims=True)
    var = ((x - mu) ** 2).mean(-1, keepdims=True)
    x = (x - mu) / jnp.sqrt(var + _EPS) * p["down_norm_g"] + p["down_norm_b"]
    x = x @ p["down_reduction_w"].T

    # UpSample
    x = x @ p["up_linear1_w"].T
    x = (x.reshape(B, Z, H // 2, W // 2, 2, 2, dim)
          .transpose(0, 1, 2, 4, 3, 5, 6).reshape(B, -1, dim))
    mu = x.mean(-1, keepdims=True)
    var = ((x - mu) ** 2).mean(-1, keepdims=True)
    x = (x - mu) / jnp.sqrt(var + _EPS) * p["up_norm_g"] + p["up_norm_b"]
    x = x @ p["up_linear2_w"].T

    # skip concat + PatchRecovery (z = -1 slice) + ReLU
    x = jnp.concatenate([skip, x], axis=-1)                               # (B,48,32)
    x = x.transpose(0, 2, 1).reshape(B, 2 * dim, Z, H, W)[:, :, -1]       # (B,32,4,4)
    y = jnp.einsum("bchw,cokl->bohkwl", x, p["deconv_w"])
    y = y.reshape(B, OUT_CH, IMG_H, IMG_W) + p["deconv_b"][None, :, None, None]
    return jnp.maximum(y, 0.0)


# ----------------------------------- main ------------------------------------
if __name__ == "__main__":
    key = jax.random.PRNGKey(0)
    k_p, k_s, k_u, k_c = jax.random.split(key, 4)

    params = init_params(k_p)
    kparams = prepare_params(params)      # one-time weight prep (outside the jitted fwd)

    input_surface = jax.random.normal(k_s, (2, SURFACE_CH, IMG_H, IMG_W), jnp.float32)
    input_upper = jax.random.normal(k_u, (2, UPPER_CH, UPPER_LEVELS, IMG_H, IMG_W), jnp.float32)
    input_scalar = jax.random.normal(k_c, (2, SCALAR_CH), jnp.float32)

    fwd = jax.jit(swin_unet_forward)
    out = jax.block_until_ready(fwd(kparams, input_surface, input_upper, input_scalar))

    assert out.shape == (2, OUT_CH, IMG_H, IMG_W), out.shape
    assert bool(jnp.all(out >= 0.0)) and bool(jnp.all(jnp.isfinite(out)))

    # numerical check against the plain-JAX mirror of the PyTorch forward
    ref = jax.block_until_ready(
        jax.jit(reference_forward)(params, input_surface, input_upper, input_scalar))
    max_err = float(jnp.max(jnp.abs(out - ref)))
    assert max_err < 5e-3, f"kernel/reference mismatch: max_abs_err={max_err}"

    print("KERNEL_OK")
</pallas_src>

<mosaic_0001>
module attributes {stable_mosaic.version = 11 : i64} {
  func.func @_swin_unet_fused_kernel(%arg0: memref<12x1280xf32, #tpu.memory_space<vmem>>, %arg1: memref<2048x128xf32, #tpu.memory_space<vmem>>, %arg2: memref<7x128xf32, #tpu.memory_space<vmem>>, %arg3: memref<4x128xf32, #tpu.memory_space<vmem>>) attributes {dimension_semantics = [], scalar_prefetch = 0 : i64, scratch_operands = 0 : i64, tpu.core_type = #tpu.core_type<tc>} {
    %c0 = arith.constant 0 : index
    %c0_0 = arith.constant 0 : index
    %0 = vector.load %arg2[%c0, %c0_0] : memref<7x128xf32, #tpu.memory_space<vmem>>, vector<7x128xf32>
    %1 = vector.extract_strided_slice %0 {offsets = [0, 0], sizes = [1, 128], strides = [1, 1]} : vector<7x128xf32> to vector<1x128xf32>
    %2 = vector.extract_strided_slice %0 {offsets = [1, 0], sizes = [1, 128], strides = [1, 1]} : vector<7x128xf32> to vector<1x128xf32>
    %3 = vector.extract_strided_slice %0 {offsets = [2, 0], sizes = [1, 128], strides = [1, 1]} : vector<7x128xf32> to vector<1x128xf32>
    %4 = vector.extract_strided_slice %0 {offsets = [3, 0], sizes = [1, 128], strides = [1, 1]} : vector<7x128xf32> to vector<1x128xf32>
    %5 = vector.extract_strided_slice %0 {offsets = [4, 0], sizes = [1, 128], strides = [1, 1]} : vector<7x128xf32> to vector<1x128xf32>
    %6 = vector.extract_strided_slice %0 {offsets = [5, 0], sizes = [1, 128], strides = [1, 1]} : vector<7x128xf32> to vector<1x128xf32>
    %7 = vector.extract_strided_slice %0 {offsets = [6, 0], sizes = [1, 128], strides = [1, 1]} : vector<7x128xf32> to vector<1x128xf32>
    %8 = tpu.iota {dimensions = array<i32: 0>} : vector<12x128xi32>
    %c8_i32 = arith.constant 8 : i32
    %9 = vector.broadcast %c8_i32 : i32 to vector<12x128xi32>
    %10 = arith.cmpi sge, %8, %9 : vector<12x128xi32>
    %c0_1 = arith.constant 0 : index
    %c0_2 = arith.constant 0 : index
    %11 = vector.load %arg0[%c0_1, %c0_2] : memref<12x1280xf32, #tpu.memory_space<vmem>>, vector<12x1280xf32>
    %c0_3 = arith.constant 0 : index
    %c0_4 = arith.constant 0 : index
    %12 = vector.load %arg1[%c0_3, %c0_4] : memref<2048x128xf32, #tpu.memory_space<vmem>>, vector<1280x128xf32>
    %cst = arith.constant dense<0.000000e+00> : vector<12x128xf32>
    %13 = tpu.matmul %11, %12, %cst {dimension_numbers = #tpu.dot_dimension_numbers<[1], [0], [0], [1], [0, 0, 1, 1], [], []>} : vector<12x1280xf32>, vector<1280x128xf32>, vector<12x128xf32> -> vector<12x128xf32>
    %14 = vector.shape_cast %2 : vector<1x128xf32> to vector<1x128xf32>
    %15 = vector.broadcast %14 : vector<1x128xf32> to vector<12x128xf32>
    %16 = vector.shape_cast %1 : vector<1x128xf32> to vector<1x128xf32>
    %17 = vector.broadcast %16 : vector<1x128xf32> to vector<12x128xf32>
    %18 = arith.select %10, %15, %17 : vector<12x128xi1>, vector<12x128xf32>
    %19 = arith.addf %13, %18 : vector<12x128xf32>
    %20 = vector.extract_strided_slice %19 {offsets = [8, 0], sizes = [4, 128], strides = [1, 1]} : vector<12x128xf32> to vector<4x128xf32>
    %c1280 = arith.constant 1280 : index
    %c0_5 = arith.constant 0 : index
    %21 = vector.load %arg1[%c1280, %c0_5] : memref<2048x128xf32, #tpu.memory_space<vmem>>, vector<128x128xf32>
    %cst_6 = arith.constant dense<0.000000e+00> : vector<12x128xf32>
    %22 = tpu.matmul %19, %21, %cst_6 {dimension_numbers = #tpu.dot_dimension_numbers<[1], [0], [0], [1], [0, 0, 1, 1], [], []>} : vector<12x128xf32>, vector<128x128xf32>, vector<12x128xf32> -> vector<12x128xf32>
    %23 = arith.subf %19, %22 : vector<12x128xf32>
    %24 = arith.mulf %23, %23 : vector<12x128xf32>
    %cst_7 = arith.constant dense<0.000000e+00> : vector<12x128xf32>
    %25 = tpu.matmul %24, %21, %cst_7 {dimension_numbers = #tpu.dot_dimension_numbers<[1], [0], [0], [1], [0, 0, 1, 1], [], []>} : vector<12x128xf32>, vector<128x128xf32>, vector<12x128xf32> -> vector<12x128xf32>
    %cst_8 = arith.constant 9.99999974E-6 : f32
    %26 = vector.broadcast %cst_8 : f32 to vector<12x128xf32>
    %27 = arith.addf %25, %26 : vector<12x128xf32>
    %28 = math.rsqrt %27 : vector<12x128xf32>
    %29 = arith.mulf %23, %28 : vector<12x128xf32>
    %30 = vector.broadcast %3 : vector<1x128xf32> to vector<12x128xf32>
    %31 = arith.mulf %29, %30 : vector<12x128xf32>
    %32 = vector.broadcast %4 : vector<1x128xf32> to vector<12x128xf32>
    %33 = arith.addf %31, %32 : vector<12x128xf32>
    %c1408 = arith.constant 1408 : index
    %c0_9 = arith.constant 0 : index
    %34 = vector.load %arg1[%c1408, %c0_9] : memref<2048x128xf32, #tpu.memory_space<vmem>>, vector<128x128xf32>
    %cst_10 = arith.constant dense<0.000000e+00> : vector<12x128xf32>
    %35 = tpu.matmul %33, %34, %cst_10 {dimension_numbers = #tpu.dot_dimension_numbers<[1], [0], [0], [1], [0, 0, 1, 1], [], []>} : vector<12x128xf32>, vector<128x128xf32>, vector<12x128xf32> -> vector<12x128xf32>
    %c1536 = arith.constant 1536 : index
    %c0_11 = arith.constant 0 : index
    %36 = vector.load %arg1[%c1536, %c0_11] : memref<2048x128xf32, #tpu.memory_space<vmem>>, vector<128x128xf32>
    %cst_12 = arith.constant dense<0.000000e+00> : vector<12x128xf32>
    %37 = tpu.matmul %35, %36, %cst_12 {dimension_numbers = #tpu.dot_dimension_numbers<[1], [0], [0], [1], [0, 0, 1, 1], [], []>} : vector<12x128xf32>, vector<128x128xf32>, vector<12x128xf32> -> vector<12x128xf32>
    %38 = arith.subf %35, %37 : vector<12x128xf32>
    %39 = arith.mulf %38, %38 : vector<12x128xf32>
    %cst_13 = arith.constant dense<0.000000e+00> : vector<12x128xf32>
    %40 = tpu.matmul %39, %36, %cst_13 {dimension_numbers = #tpu.dot_dimension_numbers<[1], [0], [0], [1], [0, 0, 1, 1], [], []>} : vector<12x128xf32>, vector<128x128xf32>, vector<12x128xf32> -> vector<12x128xf32>
    %cst_14 = arith.constant 9.99999974E-6 : f32
    %41 = vector.broadcast %cst_14 : f32 to vector<12x128xf32>
    %42 = arith.addf %40, %41 : vector<12x128xf32>
    %43 = math.rsqrt %42 : vector<12x128xf32>
    %44 = arith.mulf %38, %43 : vector<12x128xf32>
    %45 = vector.broadcast %5 : vector<1x128xf32> to vector<12x128xf32>
    %46 = arith.mulf %44, %45 : vector<12x128xf32>
    %47 = vector.broadcast %6 : vector<1x128xf32> to vector<12x128xf32>
    %48 = arith.addf %46, %47 : vector<12x128xf32>
    %c1664 = arith.constant 1664 : index
    %c0_15 = arith.constant 0 : index
    %49 = vector.load %arg1[%c1664, %c0_15] : memref<2048x128xf32, #tpu.memory_space<vmem>>, vector<128x128xf32>
    %cst_16 = arith.constant dense<0.000000e+00> : vector<12x128xf32>
    %50 = tpu.matmul %48, %49, %cst_16 {dimension_numbers = #tpu.dot_dimension_numbers<[1], [0], [0], [1], [0, 0, 1, 1], [], []>} : vector<12x128xf32>, vector<128x128xf32>, vector<12x128xf32> -> vector<12x128xf32>
    %51 = vector.extract_strided_slice %50 {offsets = [8, 0], sizes = [4, 128], strides = [1, 1]} : vector<12x128xf32> to vector<4x128xf32>
    %52 = tpu.concatenate %20, %51 in 1 : vector<4x128xf32>, vector<4x128xf32> -> vector<4x256xf32>
    %c1792 = arith.constant 1792 : index
    %c0_17 = arith.constant 0 : index
    %53 = vector.load %arg1[%c1792, %c0_17] : memref<2048x128xf32, #tpu.memory_space<vmem>>, vector<256x128xf32>
    %cst_18 = arith.constant dense<0.000000e+00> : vector<4x128xf32>
    %54 = tpu.matmul %52, %53, %cst_18 {dimension_numbers = #tpu.dot_dimension_numbers<[1], [0], [0], [1], [0, 0, 1, 1], [], []>} : vector<4x256xf32>, vector<256x128xf32>, vector<4x128xf32> -> vector<4x128xf32>
    %55 = vector.broadcast %7 : vector<1x128xf32> to vector<4x128xf32>
    %56 = arith.addf %54, %55 : vector<4x128xf32>
    %cst_19 = arith.constant 0.000000e+00 : f32
    %57 = vector.broadcast %cst_19 : f32 to vector<4x128xf32>
    %58 = arith.maximumf %56, %57 : vector<4x128xf32>
    %c0_20 = arith.constant 0 : index
    %c0_21 = arith.constant 0 : index
    %59 = vector.load %arg3[%c0_20, %c0_21] : memref<4x128xf32, #tpu.memory_space<vmem>>, vector<4x128xf32>
    tpu.vector_store %arg3[%c0_20, %c0_21], %58 {strides = array<i32>} : memref<4x128xf32, #tpu.memory_space<vmem>>, vector<4x128xf32>,
    return
  }
}

</mosaic_0001>

<bundles_post_ra>
// kernel: swin_unet_forward.1
= control target key start
LH: loop header
LB: loop body
LE: loop exit
PB: predicated region body
PF: predicated region fallthrough
CT: control target
= control target key end

     0   :  { %s3082_s1 = inlined_call_operand.vmem [shape: f32[2048,128], index: 1, kind: input, shape index: {}]   ;;  %s3083_s0 = inlined_call_operand.vmem [shape: f32[12,1280], index: 0, kind: input, shape index: {}]   ;;  %s3084_s2 = inlined_call_operand.vmem [shape: f32[7,128], index: 2, kind: input, shape index: {}]   ;;  %s3085_s3 = inlined_call_operand.vmem [shape: f32[4,128], index: 3, kind: output, shape index: {}]  }
   0x1   :  { %v56_v0 = vld [vmem:[%s3082_s1 + $0x80] sm:$0xff]  ;;  %v57_v1 = vld [vmem:[%s3082_s1 + $0x88] sm:$0xff]  ;;  %v58_v11 = vld [vmem:[%s3082_s1 + $0x90] sm:$0xff] }
   0x2   :  { %v40_v2 = vld [vmem:[%s3082_s1] sm:$0xff]  ;;  %v1793_v3 = vpack.c.bf16 %v57_v1, %v56_v0  ;;  %v41_v4 = vld [vmem:[%s3082_s1 + $0x8] sm:$0xff]  ;;  %v59_v13 = vld [vmem:[%s3082_s1 + $0x98] sm:$0xff] }
   0x3   :  { %v88_v5 = vld [vmem:[%s3082_s1 + $0x180] sm:$0xff]  ;;  %v89_v6 = vld [vmem:[%s3082_s1 + $0x188] sm:$0xff]  ;;  %v1795_v7 = vpack.c.bf16 %v41_v4, %v40_v2  ;;  %v42_v14 = vld [vmem:[%s3082_s1 + $0x10] sm:$0xff]  ;;  %v1797_v16 = vpack.c.bf16 %v59_v13, %v58_v11 }
   0x4   :  { %v1825_v8 = vpack.c.bf16 %v89_v6, %v88_v5  ;;  %v72_v9 = vld [vmem:[%s3082_s1 + $0x100] sm:$0xff]  ;;  %v73_v10 = vld [vmem:[%s3082_s1 + $0x108] sm:$0xff]  ;;  %1794 = vmatprep.subr.bf16.mxu0 %v1793_v3  ;;  %v43_v15 = vld [vmem:[%s3082_s1 + $0x18] sm:$0xff] }
   0x5   :  { %v1827_v12 = vpack.c.bf16 %v73_v10, %v72_v9  ;;  %1796 = vmatpush3.bf16.msra.mxu0 %v1795_v7  ;;  %v1799_v17 = vpack.c.bf16 %v43_v15, %v42_v14  ;;  %v90_v18 = vld [vmem:[%s3082_s1 + $0x190] sm:$0xff]  ;;  %v91_v19 = vld [vmem:[%s3082_s1 + $0x198] sm:$0xff]  ;;  %v60_v23 = vld [vmem:[%s3082_s1 + $0xa0] sm:$0xff] }
   0x6   :  { %1826 = vmatprep.subr.bf16.mxu1 %v1825_v8  ;;  %v74_v20 = vld [vmem:[%s3082_s1 + $0x110] sm:$0xff]  ;;  %v1829_v21 = vpack.c.bf16 %v91_v19, %v90_v18  ;;  %v75_v22 = vld [vmem:[%s3082_s1 + $0x118] sm:$0xff]  ;;  %v61_v24 = vld [vmem:[%s3082_s1 + $0xa8] sm:$0xff]  ;;  %1798 = vmatprep.subr.bf16.mxu0 %v1797_v16 }
   0x7   :  { %1828 = vmatpush3.bf16.msra.mxu1 %v1827_v12  ;;  %v1831_v25 = vpack.c.bf16 %v75_v22, %v74_v20  ;;  %v1801_v26 = vpack.c.bf16 %v61_v24, %v60_v23  ;;  %v44_v27 = vld [vmem:[%s3082_s1 + $0x20] sm:$0xff]  ;;  %v45_v28 = vld [vmem:[%s3082_s1 + $0x28] sm:$0xff]  ;;  %v62_v35 = vld [vmem:[%s3082_s1 + $0xb0] sm:$0xff] }
   0x8   :  { %v92_v29 = vld [vmem:[%s3082_s1 + $0x1a0] sm:$0xff]  ;;  %1830 = vmatprep.subr.bf16.mxu1 %v1829_v21  ;;  %v93_v30 = vld [vmem:[%s3082_s1 + $0x1a8] sm:$0xff]  ;;  %v1803_v33 = vpack.c.bf16 %v45_v28, %v44_v27  ;;  %v63_v36 = vld [vmem:[%s3082_s1 + $0xb8] sm:$0xff] }
   0x9   :  { %v76_v31 = vld [vmem:[%s3082_s1 + $0x120] sm:$0xff]  ;;  %v77_v32 = vld [vmem:[%s3082_s1 + $0x128] sm:$0xff]  ;;  %1800 = vmatpush3.bf16.msra.mxu0 %v1799_v17  ;;  %v1833_v34 = vpack.c.bf16 %v93_v30, %v92_v29  ;;  %v46_v37 = vld [vmem:[%s3082_s1 + $0x30] sm:$0xff]  ;;  %v1805_v39 = vpack.c.bf16 %v63_v36, %v62_v35 }
   0xa   :  { %1802 = vmatprep.subr.bf16.mxu0 %v1801_v26  ;;  %v1835_v38 = vpack.c.bf16 %v77_v32, %v76_v31  ;;  %v47_v40 = vld [vmem:[%s3082_s1 + $0x38] sm:$0xff]  ;;  %v94_v41 = vld [vmem:[%s3082_s1 + $0x1b0] sm:$0xff]  ;;  %v64_v46 = vld [vmem:[%s3082_s1 + $0xc0] sm:$0xff] }
   0xb   :  { %1832 = vmatpush3.bf16.msra.mxu1 %v1831_v25  ;;  %v95_v42 = vld [vmem:[%s3082_s1 + $0x1b8] sm:$0xff]  ;;  %v78_v44 = vld [vmem:[%s3082_s1 + $0x130] sm:$0xff]  ;;  %v65_v47 = vld [vmem:[%s3082_s1 + $0xc8] sm:$0xff]  ;;  %v1807_v48 = vpack.c.bf16 %v47_v40, %v46_v37 }
   0xc   :  { %1834 = vmatprep.subr.bf16.mxu1 %v1833_v34  ;;  %v1837_v43 = vpack.c.bf16 %v95_v42, %v94_v41  ;;  %v79_v45 = vld [vmem:[%s3082_s1 + $0x138] sm:$0xff]  ;;  %v96_v49 = vld [vmem:[%s3082_s1 + $0x1c0] sm:$0xff]  ;;  %v97_v50 = vld [vmem:[%s3082_s1 + $0x1c8] sm:$0xff]  ;;  %v1809_v52 = vpack.c.bf16 %v65_v47, %v64_v46 }
   0xd   :  { %1804 = vmatpush3.bf16.msra.mxu0 %v1803_v33  ;;  %v1839_v51 = vpack.c.bf16 %v79_v45, %v78_v44  ;;  %v48_v53 = vld [vmem:[%s3082_s1 + $0x40] sm:$0xff]  ;;  %v49_v54 = vld [vmem:[%s3082_s1 + $0x48] sm:$0xff]  ;;  %v1841_v56 = vpack.c.bf16 %v97_v50, %v96_v49  ;;  %v66_v58 = vld [vmem:[%s3082_s1 + $0xd0] sm:$0xff] }
   0xe   :  { %1806 = vmatprep.subr.bf16.mxu0 %v1805_v39  ;;  %v80_v55 = vld [vmem:[%s3082_s1 + $0x140] sm:$0xff]  ;;  %v81_v57 = vld [vmem:[%s3082_s1 + $0x148] sm:$0xff]  ;;  %v67_v59 = vld [vmem:[%s3082_s1 + $0xd8] sm:$0xff]  ;;  %v1811_v62 = vpack.c.bf16 %v49_v54, %v48_v53 }
   0xf   :  { %1836 = vmatpush3.bf16.msra.mxu1 %v1835_v38  ;;  %v98_v60 = vld [vmem:[%s3082_s1 + $0x1d0] sm:$0xff]  ;;  %v99_v61 = vld [vmem:[%s3082_s1 + $0x1d8] sm:$0xff]  ;;  %v1843_v63 = vpack.c.bf16 %v81_v57, %v80_v55  ;;  %v1813_v0 = vpack.c.bf16 %v67_v59, %v66_v58  ;;  %v68_v6 = vld [vmem:[%s3082_s1 + $0xe0] sm:$0xff] }
  0x10   :  { %1838 = vmatprep.subr.bf16.mxu1 %v1837_v43  ;;  %v50_v1 = vld [vmem:[%s3082_s1 + $0x50] sm:$0xff]  ;;  %v51_v2 = vld [vmem:[%s3082_s1 + $0x58] sm:$0xff]  ;;  %v1845_v4 = vpack.c.bf16 %v99_v61, %v98_v60  ;;  %v69_v7 = vld [vmem:[%s3082_s1 + $0xe8] sm:$0xff] }
  0x11   :  { %1808 = vmatpush3.bf16.msra.mxu0 %v1807_v48  ;;  %v82_v3 = vld [vmem:[%s3082_s1 + $0x150] sm:$0xff]  ;;  %v83_v5 = vld [vmem:[%s3082_s1 + $0x158] sm:$0xff]  ;;  %v100_v8 = vld [vmem:[%s3082_s1 + $0x1e0] sm:$0xff]  ;;  %v1815_v10 = vpack.c.bf16 %v51_v2, %v50_v1  ;;  %v1817_v14 = vpack.c.bf16 %v69_v7, %v68_v6 }
  0x12   :  { %1810 = vmatprep.subr.bf16.mxu0 %v1809_v52  ;;  %v101_v9 = vld [vmem:[%s3082_s1 + $0x1e8] sm:$0xff]  ;;  %v52_v11 = vld [vmem:[%s3082_s1 + $0x60] sm:$0xff]  ;;  %v1847_v13 = vpack.c.bf16 %v83_v5, %v82_v3  ;;  %v70_v19 = vld [vmem:[%s3082_s1 + $0xf0] sm:$0xff] }
  0x13   :  { %1840 = vmatpush3.bf16.msra.mxu1 %v1839_v51  ;;  %v21_v12 = vld [vmem:[%s3083_s0 + $0x8] sm:$0xff]  ;;  %v84_v16 = vld [vmem:[%s3082_s1 + $0x160] sm:$0xff]  ;;  %v1849_v18 = vpack.c.bf16 %v101_v9, %v100_v8  ;;  %v71_v20 = vld [vmem:[%s3082_s1 + $0xf8] sm:$0xff] }
  0x14   :  { %1842 = vmatprep.subr.bf16.mxu1 %v1841_v56  ;;  %v53_v15 = vld [vmem:[%s3082_s1 + $0x68] sm:$0xff]  ;;  %274 = vmatprep.mubr.f32.mxu0 %v21_v12  ;;  %v23_v21 = vld [vmem:[%s3083_s0 + $0x18] sm:$0xff]  ;;  %v102_v22 = vld [vmem:[%s3082_s1 + $0x1f0] sm:$0xff]  ;;  %v1821_v26 = vpack.c.bf16 %v71_v20, %v70_v19 }
  0x15   :  { %1812 = vmatpush3.bf16.msra.mxu0 %v1811_v62  ;;  %v85_v17 = vld [vmem:[%s3082_s1 + $0x168] sm:$0xff]  ;;  %v103_v23 = vld [vmem:[%s3082_s1 + $0x1f8] sm:$0xff]  ;;  %349 = vmatprep.mubr.f32.mxu1 %v23_v21  ;;  %v1819_v24 = vpack.c.bf16 %v53_v15, %v52_v11  ;;  %v54_v27 = vld [vmem:[%s3082_s1 + $0x70] sm:$0xff] }
  0x16   :  { %1814 = vmatprep.subr.bf16.mxu0 %v1813_v0  ;;  %v1851_v25 = vpack.c.bf16 %v85_v17, %v84_v16  ;;  %v55_v28 = vld [vmem:[%s3082_s1 + $0x78] sm:$0xff]  ;;  %v86_v29 = vld [vmem:[%s3082_s1 + $0x170] sm:$0xff]  ;;  %v1853_v30 = vpack.c.bf16 %v103_v23, %v102_v22  ;;  %v120_v32 = vld [vmem:[%s3082_s1 + $0x280] sm:$0xff] }
  0x17   :  { %1844 = vmatpush3.bf16.msra.mxu1 %v1843_v63  ;;  %v87_v31 = vld [vmem:[%s3082_s1 + $0x178] sm:$0xff]  ;;  %v121_v33 = vld [vmem:[%s3082_s1 + $0x288] sm:$0xff]  ;;  %v152_v34 = vld [vmem:[%s3082_s1 + $0x380] sm:$0xff]  ;;  %v1823_v36 = vpack.c.bf16 %v55_v28, %v54_v27 }
  0x18   :  { %1846 = vmatprep.subr.bf16.mxu1 %v1845_v4  ;;  %v153_v35 = vld [vmem:[%s3082_s1 + $0x388] sm:$0xff]  ;;  %v1855_v37 = vpack.c.bf16 %v87_v31, %v86_v29  ;;  %v1857_v38 = vpack.c.bf16 %v121_v33, %v120_v32  ;;  %v104_v39 = vld [vmem:[%s3082_s1 + $0x200] sm:$0xff]  ;;  %v122_v44 = vld [vmem:[%s3082_s1 + $0x290] sm:$0xff] }
  0x19   :  { %1816 = vmatpush3.bf16.msra.mxu0 %v1815_v10  ;;  %v105_v40 = vld [vmem:[%s3082_s1 + $0x208] sm:$0xff]  ;;  %v136_v41 = vld [vmem:[%s3082_s1 + $0x300] sm:$0xff]  ;;  %v1889_v42 = vpack.c.bf16 %v153_v35, %v152_v34  ;;  %v123_v45 = vld [vmem:[%s3082_s1 + $0x298] sm:$0xff] }
  0x1a   :  { %1818 = vmatprep.subr.bf16.mxu0 %v1817_v14  ;;  %v137_v43 = vld [vmem:[%s3082_s1 + $0x308] sm:$0xff]  ;;  %v154_v46 = vld [vmem:[%s3082_s1 + $0x390] sm:$0xff]  ;;  %v155_v47 = vld [vmem:[%s3082_s1 + $0x398] sm:$0xff]  ;;  %v1859_v49 = vpack.c.bf16 %v105_v40, %v104_v39  ;;  %v1861_v52 = vpack.c.bf16 %v123_v45, %v122_v44 }
  0x1b   :  { %1848 = vmatpush3.bf16.msra.mxu1 %v1847_v13  ;;  %v20_v48 = vld [vmem:[%s3083_s0] sm:$0xff]  ;;  %v22_v50 = vld [vmem:[%s3083_s0 + $0x10] sm:$0xff]  ;;  %v1891_v51 = vpack.c.bf16 %v137_v43, %v136_v41  ;;  %v107_v54 = vld [vmem:[%s3082_s1 + $0x218] sm:$0xff]  ;;  %v1893_v56 = vpack.c.bf16 %v155_v47, %v154_v46 }
  0x1c   :  { %1850 = vmatprep.subr.bf16.mxu1 %v1849_v18  ;;  %v106_v53 = vld [vmem:[%s3082_s1 + $0x210] sm:$0xff]  ;;  %v139_v57 = vld [vmem:[%s3082_s1 + $0x318] sm:$0xff]  ;;  %v124_v58 = vld [vmem:[%s3082_s1 + $0x2a0] sm:$0xff] }
  0x1d   :  { %1820 = vmatpush3.bf16.msra.mxu0 %v1819_v24  ;;  %v138_v55 = vld [vmem:[%s3082_s1 + $0x310] sm:$0xff]  ;;  %v125_v59 = vld [vmem:[%s3082_s1 + $0x2a8] sm:$0xff]  ;;  %v156_v60 = vld [vmem:[%s3082_s1 + $0x3a0] sm:$0xff]  ;;  %v1863_v62 = vpack.c.bf16 %v107_v54, %v106_v53 }
  0x1e   :  { %1822 = vmatprep.subr.bf16.mxu0 %v1821_v26  ;;  %v157_v61 = vld [vmem:[%s3082_s1 + $0x3a8] sm:$0xff]  ;;  %v1895_v63 = vpack.c.bf16 %v139_v57, %v138_v55  ;;  %v1865_v0 = vpack.c.bf16 %v125_v59, %v124_v58  ;;  %v108_v1 = vld [vmem:[%s3082_s1 + $0x220] sm:$0xff]  ;;  %v126_v6 = vld [vmem:[%s3082_s1 + $0x2b0] sm:$0xff] }
  0x1f   :  { %1852 = vmatpush3.bf16.msra.mxu1 %v1851_v25  ;;  %v109_v2 = vld [vmem:[%s3082_s1 + $0x228] sm:$0xff]  ;;  %v140_v3 = vld [vmem:[%s3082_s1 + $0x320] sm:$0xff]  ;;  %v1897_v4 = vpack.c.bf16 %v157_v61, %v156_v60  ;;  %v127_v7 = vld [vmem:[%s3082_s1 + $0x2b8] sm:$0xff] }
  0x20   :  { %1854 = vmatprep.subr.bf16.mxu1 %v1853_v30  ;;  %v141_v5 = vld [vmem:[%s3082_s1 + $0x328] sm:$0xff]  ;;  %v158_v8 = vld [vmem:[%s3082_s1 + $0x3b0] sm:$0xff]  ;;  %v159_v9 = vld [vmem:[%s3082_s1 + $0x3b8] sm:$0xff]  ;;  %v1867_v10 = vpack.c.bf16 %v109_v2, %v108_v1  ;;  %v1869_v15 = vpack.c.bf16 %v127_v7, %v126_v6 }
  0x21   :  { %1824 = vmatpush3.bf16.msra.mxu0 %v1823_v36  ;;  %v110_v11 = vld [vmem:[%s3082_s1 + $0x230] sm:$0xff]  ;;  %v111_v12 = vld [vmem:[%s3082_s1 + $0x238] sm:$0xff]  ;;  %v1899_v14 = vpack.c.bf16 %v141_v5, %v140_v3  ;;  %v1901_v19 = vpack.c.bf16 %v159_v9, %v158_v8  ;;  %v128_v20 = vld [vmem:[%s3082_s1 + $0x2c0] sm:$0xff] }
  0x22   :  { %1858 = vmatprep.subr.bf16.mxu0 %v1857_v38  ;;  %v31_v13 = vld [vmem:[%s3083_s0 + $0x58] sm:$0xf]  ;;  %v142_v16 = vld [vmem:[%s3082_s1 + $0x330] sm:$0xff]  ;;  %v129_v21 = vld [vmem:[%s3082_s1 + $0x2c8] sm:$0xff]  ;;  %v1871_v26 = vpack.c.bf16 %v111_v12, %v110_v11 }
  0x23   :  { %1856 = vmatpush3.bf16.msra.mxu1 %v1855_v37  ;;  %v143_v17 = vld [vmem:[%s3082_s1 + $0x338] sm:$0xff]  ;;  %v30_v18 = vld [vmem:[%s3083_s0 + $0x50] sm:$0xf]  ;;  %v33_v22 = vld [vmem:[%s3083_s0 + $0x68] sm:$0xf]  ;;  %v1873_v30 = vpack.c.bf16 %v129_v21, %v128_v20 }
  0x24   :  { %1890 = vmatprep.subr.bf16.mxu1 %v1889_v42  ;;  %275 = vmatmul.mubr.f32.vlgmr.msra.gmra.mrb[0].mxu0 %v20_v48  ;;  %v160_v23 = vld [vmem:[%s3082_s1 + $0x3c0] sm:$0xff]  ;;  %v161_v24 = vld [vmem:[%s3082_s1 + $0x3c8] sm:$0xff]  ;;  %v1903_v29 = vpack.c.bf16 %v143_v17, %v142_v16  ;;  %v130_v35 = vld [vmem:[%s3082_s1 + $0x2d0] sm:$0xff] }
  0x25   :  { %1860 = vmatpush3.bf16.msra.mxu0 %v1859_v49  ;;  %279 = vmatprep.mubr.f32.mxu0 %v31_v13  ;;  %v32_v25 = vld [vmem:[%s3083_s0 + $0x60] sm:$0xf]  ;;  %v25_v28 = vld [vmem:[%s3083_s0 + $0x28] sm:$0xff]  ;;  %v1905_v34 = vpack.c.bf16 %v161_v24, %v160_v23  ;;  %v131_v36 = vld [vmem:[%s3082_s1 + $0x2d8] sm:$0xff] }
  0x26   :  { %350 = vmatmul.mubr.f32.vlgmr.msra.gmra.mrb[0].mxu1 %v22_v50  ;;  %1862 = vmatprep.subr.bf16.mxu0 %v1861_v52  ;;  %v112_v27 = vld [vmem:[%s3082_s1 + $0x240] sm:$0xff]  ;;  %v113_v31 = vld [vmem:[%s3082_s1 + $0x248] sm:$0xff]  ;;  %v27_v37 = vld [vmem:[%s3083_s0 + $0x38] sm:$0xff]  ;;  %v1877_v42 = vpack.c.bf16 %v131_v36, %v130_v35 }
  0x27   :  { %1892 = vmatpush3.bf16.msra.mxu1 %v1891_v51  ;;  %354 = vmatprep.mubr.f32.mxu1 %v33_v22  ;;  %v144_v32 = vld [vmem:[%s3082_s1 + $0x340] sm:$0xff]  ;;  %v145_v33 = vld [vmem:[%s3082_s1 + $0x348] sm:$0xff]  ;;  %v162_v38 = vld [vmem:[%s3082_s1 + $0x3d0] sm:$0xff]  ;;  %v1875_v40 = vpack.c.bf16 %v113_v31, %v112_v27 }
  0x28   :  { %1894 = vmatprep.subr.bf16.mxu1 %v1893_v56  ;;  %280 = vmatmul.mubr.f32.gmra.mrb[2].mxu0 %v30_v18  ;;  %v163_v39 = vld [vmem:[%s3082_s1 + $0x3d8] sm:$0xff]  ;;  %v1907_v41 = vpack.c.bf16 %v145_v33, %v144_v32  ;;  %v114_v43 = vld [vmem:[%s3082_s1 + $0x250] sm:$0xff]  ;;  %v132_v48 = vld [vmem:[%s3082_s1 + $0x2e0] sm:$0xff] }
  0x29   :  { %1864 = vmatpush3.bf16.msra.mxu0 %v1863_v62  ;;  %424 = vmatprep.mubr.f32.mxu0 %v25_v28  ;;  %v115_v44 = vld [vmem:[%s3082_s1 + $0x258] sm:$0xff]  ;;  %v146_v45 = vld [vmem:[%s3082_s1 + $0x350] sm:$0xff]  ;;  %v1909_v46 = vpack.c.bf16 %v163_v39, %v162_v38  ;;  %v133_v49 = vld [vmem:[%s3082_s1 + $0x2e8] sm:$0xff] }
  0x2a   :  { %1866 = vmatprep.subr.bf16.mxu0 %v1865_v0  ;;  %355 = vmatmul.mubr.f32.gmra.mrb[2].mxu1 %v32_v25  ;;  %v147_v47 = vld [vmem:[%s3082_s1 + $0x358] sm:$0xff]  ;;  %v164_v50 = vld [vmem:[%s3082_s1 + $0x3e0] sm:$0xff]  ;;  %v165_v51 = vld [vmem:[%s3082_s1 + $0x3e8] sm:$0xff]  ;;  %v1879_v52 = vpack.c.bf16 %v115_v44, %v114_v43  ;;  %v1881_v54 = vpack.c.bf16 %v133_v49, %v132_v48 }
  0x2b   :  { %1896 = vmatpush3.bf16.msra.mxu1 %v1895_v63  ;;  %499 = vmatprep.mubr.f32.mxu1 %v27_v37  ;;  %v1911_v53 = vpack.c.bf16 %v147_v47, %v146_v45  ;;  %v116_v55 = vld [vmem:[%s3082_s1 + $0x260] sm:$0xff]  ;;  %v117_v56 = vld [vmem:[%s3082_s1 + $0x268] sm:$0xff]  ;;  %v1913_v58 = vpack.c.bf16 %v165_v51, %v164_v50  ;;  %v134_v60 = vld [vmem:[%s3082_s1 + $0x2f0] sm:$0xff] }
  0x2c   :  { %1898 = vmatprep.subr.bf16.mxu1 %v1897_v4  ;;  %v148_v57 = vld [vmem:[%s3082_s1 + $0x360] sm:$0xff]  ;;  %v149_v59 = vld [vmem:[%s3082_s1 + $0x368] sm:$0xff]  ;;  %v135_v61 = vld [vmem:[%s3082_s1 + $0x2f8] sm:$0xff]  ;;  %v1883_v0 = vpack.c.bf16 %v117_v56, %v116_v55 }
  0x2d   :  { %1868 = vmatpush3.bf16.msra.mxu0 %v1867_v10  ;;  %v166_v62 = vld [vmem:[%s3082_s1 + $0x3f0] sm:$0xff]  ;;  %v167_v63 = vld [vmem:[%s3082_s1 + $0x3f8] sm:$0xff]  ;;  %v1915_v1 = vpack.c.bf16 %v149_v59, %v148_v57  ;;  %v1885_v2 = vpack.c.bf16 %v135_v61, %v134_v60  ;;  %v184_v8 = vld [vmem:[%s3082_s1 + $0x480] sm:$0xff] }
  0x2e   :  { %1870 = vmatprep.subr.bf16.mxu0 %v1869_v15  ;;  %v118_v3 = vld [vmem:[%s3082_s1 + $0x270] sm:$0xff]  ;;  %v119_v4 = vld [vmem:[%s3082_s1 + $0x278] sm:$0xff]  ;;  %v1917_v6 = vpack.c.bf16 %v167_v63, %v166_v62  ;;  %v185_v9 = vld [vmem:[%s3082_s1 + $0x488] sm:$0xff] }
  0x2f   :  { %1900 = vmatpush3.bf16.msra.mxu1 %v1899_v14  ;;  %v150_v5 = vld [vmem:[%s3082_s1 + $0x370] sm:$0xff]  ;;  %v151_v7 = vld [vmem:[%s3082_s1 + $0x378] sm:$0xff]  ;;  %v1887_v10 = vpack.c.bf16 %v119_v4, %v118_v3  ;;  %v1921_v12 = vpack.c.bf16 %v185_v9, %v184_v8  ;;  %v168_v13 = vld [vmem:[%s3082_s1 + $0x400] sm:$0xff] }
  0x30   :  { %1902 = vmatprep.subr.bf16.mxu1 %v1901_v19  ;;  %v1919_v11 = vpack.c.bf16 %v151_v7, %v150_v5  ;;  %v169_v14 = vld [vmem:[%s3082_s1 + $0x408] sm:$0xff]  ;;  %v186_v15 = vld [vmem:[%s3082_s1 + $0x490] sm:$0xff]  ;;  %v187_v16 = vld [vmem:[%s3082_s1 + $0x498] sm:$0xff] }
  0x31   :  { %1872 = vmatpush3.bf16.msra.mxu0 %v1871_v26  ;;  %v24_v17 = vld [vmem:[%s3083_s0 + $0x20] sm:$0xff]  ;;  %v1923_v18 = vpack.c.bf16 %v169_v14, %v168_v13  ;;  %v26_v19 = vld [vmem:[%s3083_s0 + $0x30] sm:$0xff]  ;;  %v1925_v20 = vpack.c.bf16 %v187_v16, %v186_v15  ;;  %v171_v22 = vld [vmem:[%s3082_s1 + $0x418] sm:$0xff] }
  0x32   :  { %1874 = vmatprep.subr.bf16.mxu0 %v1873_v30  ;;  %v170_v21 = vld [vmem:[%s3082_s1 + $0x410] sm:$0xff]  ;;  %v35_v23 = vld [vmem:[%s3083_s0 + $0x78] sm:$0xf]  ;;  %v188_v24 = vld [vmem:[%s3082_s1 + $0x4a0] sm:$0xff] }
  0x33   :  { %1904 = vmatpush3.bf16.msra.mxu1 %v1903_v29  ;;  %v189_v25 = vld [vmem:[%s3082_s1 + $0x4a8] sm:$0xff]  ;;  %v34_v27 = vld [vmem:[%s3083_s0 + $0x70] sm:$0xf]  ;;  %v1927_v28 = vpack.c.bf16 %v171_v22, %v170_v21  ;;  %v36_v29 = vld [vmem:[%s3083_s0 + $0x80] sm:$0xf] }
  0x34   :  { %1906 = vmatprep.subr.bf16.mxu1 %v1905_v34  ;;  %v37_v26 = vld [vmem:[%s3083_s0 + $0x88] sm:$0xf]  ;;  %v1929_v30 = vpack.c.bf16 %v189_v25, %v188_v24  ;;  %v172_v31 = vld [vmem:[%s3082_s1 + $0x420] sm:$0xff]  ;;  %v190_v33 = vld [vmem:[%s3082_s1 + $0x4b0] sm:$0xff] }
  0x35   :  { %1876 = vmatpush3.bf16.msra.mxu0 %v1875_v40  ;;  %v173_v32 = vld [vmem:[%s3082_s1 + $0x428] sm:$0xff]  ;;  %v191_v34 = vld [vmem:[%s3082_s1 + $0x4b8] sm:$0xff]  ;;  %v174_v38 = vld [vmem:[%s3082_s1 + $0x430] sm:$0xff] }
  0x36   :  { %1878 = vmatprep.subr.bf16.mxu0 %v1877_v42  ;;  %v29_v35 = vld [vmem:[%s3083_s0 + $0x48] sm:$0xff]  ;;  %v1931_v36 = vpack.c.bf16 %v173_v32, %v172_v31  ;;  %v1933_v37 = vpack.c.bf16 %v191_v34, %v190_v33  ;;  %v175_v39 = vld [vmem:[%s3082_s1 + $0x438] sm:$0xff]  ;;  %v192_v40 = vld [vmem:[%s3082_s1 + $0x4c0] sm:$0xff] }
  0x37   :  { %1908 = vmatpush3.bf16.msra.mxu1 %v1907_v41  ;;  %v193_v41 = vld [vmem:[%s3082_s1 + $0x4c8] sm:$0xff]  ;;  %v1935_v42 = vpack.c.bf16 %v175_v39, %v174_v38  ;;  %v176_v44 = vld [vmem:[%s3082_s1 + $0x440] sm:$0xff]  ;;  %v195_v47 = vld [vmem:[%s3082_s1 + $0x4d8] sm:$0xff] }
  0x38   :  { %1910 = vmatprep.subr.bf16.mxu1 %v1909_v46  ;;  %v1937_v43 = vpack.c.bf16 %v193_v41, %v192_v40  ;;  %v177_v45 = vld [vmem:[%s3082_s1 + $0x448] sm:$0xff]  ;;  %v194_v46 = vld [vmem:[%s3082_s1 + $0x4d0] sm:$0xff]  ;;  %v179_v51 = vld [vmem:[%s3082_s1 + $0x458] sm:$0xff] }
  0x39   :  { %1880 = vmatpush3.bf16.msra.mxu0 %v1879_v52  ;;  %v1939_v48 = vpack.c.bf16 %v177_v45, %v176_v44  ;;  %v1941_v49 = vpack.c.bf16 %v195_v47, %v194_v46  ;;  %v178_v50 = vld [vmem:[%s3082_s1 + $0x450] sm:$0xff]  ;;  %v196_v52 = vld [vmem:[%s3082_s1 + $0x4e0] sm:$0xff]  ;;  %v181_v57 = vld [vmem:[%s3082_s1 + $0x468] sm:$0xff] }
  0x3a   :  { %1882 = vmatprep.subr.bf16.mxu0 %v1881_v54  ;;  %v1943_v54 = vpack.c.bf16 %v179_v51, %v178_v50  ;;  %v180_v56 = vld [vmem:[%s3082_s1 + $0x460] sm:$0xff]  ;;  %v199_v59 = vld [vmem:[%s3082_s1 + $0x4f8] sm:$0xff]  ;;  %v182_v62 = vld [vmem:[%s3082_s1 + $0x470] sm:$0xff] }
  0x3b   :  { %1912 = vmatpush3.bf16.msra.mxu1 %v1911_v53  ;;  %v197_v53 = vld [vmem:[%s3082_s1 + $0x4e8] sm:$0xff]  ;;  %v1947_v60 = vpack.c.bf16 %v181_v57, %v180_v56  ;;  %v183_v63 = vld [vmem:[%s3082_s1 + $0x478] sm:$0xff]  ;;  %v38_v3 = vld [vmem:[%s3083_s0 + $0x90] sm:$0xf] }
  0x3c   :  { %1914 = vmatprep.subr.bf16.mxu1 %v1913_v58  ;;  %v1945_v55 = vpack.c.bf16 %v197_v53, %v196_v52  ;;  %v198_v58 = vld [vmem:[%s3082_s1 + $0x4f0] sm:$0xff]  ;;  %v585_v4 = vld [vmem:[%s3082_s1 + $0x500] sm:$0xff]  ;;  %v586_v5 = vld [vmem:[%s3082_s1 + $0x508] sm:$0xff] }
  0x3d   :  { %1884 = vmatpush3.bf16.msra.mxu0 %v1883_v0  ;;  %v1949_v61 = vpack.c.bf16 %v199_v59, %v198_v58  ;;  %v1951_v0 = vpack.c.bf16 %v183_v63, %v182_v62  ;;  %v587_v7 = vld [vmem:[%s3082_s1 + $0x510] sm:$0xff]  ;;  %v588_v8 = vld [vmem:[%s3082_s1 + $0x518] sm:$0xff]  ;;  %v589_v9 = vld [vmem:[%s3082_s1 + $0x520] sm:$0xff] }
  0x3e   :  { %1886 = vmatprep.subr.bf16.mxu0 %v1885_v2  ;;  %v39_v2 = vld [vmem:[%s3083_s0 + $0x98] sm:$0xf]  ;;  %v591_v13 = vld [vmem:[%s3082_s1 + $0x530] sm:$0xff]  ;;  %v593_v16 = vld [vmem:[%s3082_s1 + $0x540] sm:$0xff] }
  0x3f   :  { %1916 = vmatpush3.bf16.msra.mxu1 %v1915_v1  ;;  %v28_v1 = vld [vmem:[%s3083_s0 + $0x40] sm:$0xff]  ;;  %v592_v14 = vld [vmem:[%s3082_s1 + $0x538] sm:$0xff]  ;;  %v599_v25 = vld [vmem:[%s3082_s1 + $0x570] sm:$0xff] }
  0x40   :  { %1918 = vmatprep.subr.bf16.mxu1 %v1917_v6  ;;  %v1953_v6 = vpack.c.bf16 %v586_v5, %v585_v4  ;;  %v1965_v15 = vpack.c.bf16 %v592_v14, %v591_v13  ;;  %v597_v22 = vld [vmem:[%s3082_s1 + $0x560] sm:$0xff]  ;;  %v773_v13 = vld [vmem:[%s3082_s1 + $0x590] sm:$0xff] }
  0x41   :  { %1888 = vmatpush3.bf16.msra.mxu0 %v1887_v10  ;;  %v1957_v10 = vpack.c.bf16 %v588_v8, %v587_v7  ;;  %v2799_v31 = vld [vmem:[%s3084_s2] sm:$0x7f] }
  0x42   :  { %1922 = vmatprep.subr.bf16.mxu0 %v1921_v12 }
  0x43   :  { %1920 = vmatpush3.bf16.msra.mxu1 %v1919_v11  ;;  %v590_v11 = vld [vmem:[%s3082_s1 + $0x528] sm:$0xff] }
  0x44   :  { %425 = vmatmul.mubr.f32.vlgmr.msra.gmra.mrb[4].mxu0 %v24_v17  ;;  %1954 = vmatprep.subr.bf16.mxu1 %v1953_v6  ;;  %v1961_v12 = vpack.c.bf16 %v590_v11, %v589_v9  ;;  %v594_v17 = vld [vmem:[%s3082_s1 + $0x548] sm:$0xff]  ;;  %v771_v11 = vld [vmem:[%s3082_s1 + $0x580] sm:$0xff] }
  0x45   :  { %1924 = vmatpush3.bf16.msra.mxu0 %v1923_v18  ;;  %429 = vmatprep.mubr.f32.mxu0 %v35_v23  ;;  %v1969_v18 = vpack.c.bf16 %v594_v17, %v593_v16  ;;  %v598_v23 = vld [vmem:[%s3082_s1 + $0x568] sm:$0xff]  ;;  %v775_v17 = vld [vmem:[%s3082_s1 + $0x5a0] sm:$0xff] }
  0x46   :  { %500 = vmatmul.mubr.f32.vlgmr.msra.gmra.mrb[4].mxu1 %v26_v19  ;;  %1926 = vmatprep.subr.bf16.mxu0 %v1925_v20  ;;  %v595_v19 = vld [vmem:[%s3082_s1 + $0x550] sm:$0xff]  ;;  %v596_v20 = vld [vmem:[%s3082_s1 + $0x558] sm:$0xff]  ;;  %v1977_v24 = vpack.c.bf16 %v598_v23, %v597_v22 }
  0x47   :  { %504 = vmatprep.mubr.f32.mxu1 %v37_v26  ;;  %1956 = vmatpush3.bf16.msra.mxu1 %v1953_v6  ;;  %v1973_v21 = vpack.c.bf16 %v596_v20, %v595_v19  ;;  %v600_v26 = vld [vmem:[%s3082_s1 + $0x578] sm:$0xff] }
  0x48   :  { %430 = vmatmul.mubr.f32.gmra.mrb[6].mxu0 %v34_v27  ;;  %1958 = vmatprep.subr.bf16.mxu1 %v1957_v10  ;;  %v1981_v27 = vpack.c.bf16 %v600_v26, %v599_v25  ;;  %v777_v26 = vld [vmem:[%s3082_s1 + $0x5b0] sm:$0xff] }
  0x49   :  { %1928 = vmatpush3.bf16.msra.mxu0 %v1927_v28  ;;  %574 = vmatprep.mubr.f32.mxu0 %v29_v35  ;;  %v200_v28 = vlaneseq }
  0x4a   :  { %505 = vmatmul.mubr.f32.gmra.mrb[6].mxu1 %v36_v29  ;;  %1930 = vmatprep.subr.bf16.mxu0 %v1929_v30 }
  0x4b   :  { %1960 = vmatpush3.bf16.msra.mxu1 %v1957_v10  ;;  %v2793_v29 = vshrl.u32 %v200_v28, 7 }
  0x4c   :  { %1962 = vmatprep.subr.bf16.mxu1 %v1961_v12 }
  0x4d   :  { %1932 = vmatpush3.bf16.msra.mxu0 %v1931_v36  ;;  %v206_v30 = vsub.s32 0, %v2793_v29  ;;  %v202_v40 = vsub.s32 1, %v2793_v29 }
  0x4e   :  { %1934 = vmatprep.subr.bf16.mxu0 %v1933_v37 }
  0x4f   :  { %1964 = vmatpush3.bf16.msra.mxu1 %v1961_v12  ;;  %v207_v33 = vrot.slane %v2799_v31, %v206_v30  ;;  %v779_v30 = vld [vmem:[%s3082_s1 + $0x5c0] sm:$0xff] }
  0x50   :  { %1966 = vmatprep.subr.bf16.mxu1 %v1965_v15 }
  0x51   :  { %1936 = vmatpush3.bf16.msra.mxu0 %v1935_v42 }
  0x52   :  { %1938 = vmatprep.subr.bf16.mxu0 %v1937_v43  ;;  %v203_v43 = vrot.slane %v2799_v31, %v202_v40  ;;  %v785_v40 = vld [vmem:[%s3082_s1 + $0x5f0] sm:$0xff] }
  0x53   :  { %1968 = vmatpush3.bf16.msra.mxu1 %v1965_v15 }
  0x54   :  { %1970 = vmatprep.subr.bf16.mxu1 %v1969_v18 }
  0x55   :  { %1940 = vmatpush3.bf16.msra.mxu0 %v1939_v48 }
  0x56   :  { %1942 = vmatprep.subr.bf16.mxu0 %v1941_v49 }
  0x57   :  { %1972 = vmatpush3.bf16.msra.mxu1 %v1969_v18 }
  0x58   :  { %1974 = vmatprep.subr.bf16.mxu1 %v1973_v21 }
  0x59   :  { %1944 = vmatpush3.bf16.msra.mxu0 %v1943_v54 }
  0x5a   :  { %1946 = vmatprep.subr.bf16.mxu0 %v1945_v55 }
  0x5b   :  { %1976 = vmatpush3.bf16.msra.mxu1 %v1973_v21 }
  0x5c   :  { %1978 = vmatprep.subr.bf16.mxu1 %v1977_v24 }
  0x5d   :  { %1948 = vmatpush3.bf16.msra.mxu0 %v1947_v60 }
  0x5e   :  { %1950 = vmatprep.subr.bf16.mxu0 %v1949_v61 }
  0x5f   :  { %1980 = vmatpush3.bf16.msra.mxu1 %v1977_v24 }
  0x60   :  { %1982 = vmatprep.subr.bf16.mxu1 %v1981_v27 }
  0x61   :  { %1952 = vmatpush3.bf16.msra.mxu0 %v1951_v0 }
  0x62   :  { %1986 = vmatprep.subr.bf16.mxu0 %v1953_v6 }
  0x63   :  { %1984 = vmatpush3.bf16.msra.mxu1 %v1981_v27 }
  0x64   :  { %575 = vmatmul.mubr.f32.vlgmr.msra.gmra.mrb[8].mxu0 %v28_v1 }
  0x65   :  { %579 = vmatprep.mubr.f32.mxu0 %v39_v2  ;;  %1988 = vmatpush3.bf16.msra.mxu0 %v1953_v6 }
  0x66   :  { %1990 = vmatprep.subr.bf16.mxu0 %v1957_v10 }
  0x68   :  { %580 = vmatmul.mubr.f32.gmra.mrb[10].mxu0 %v38_v3 }
  0x69   :  { %1992 = vmatpush3.bf16.msra.mxu0 %v1957_v10 }
  0x6a   :  { %1994 = vmatprep.subr.bf16.mxu0 %v1961_v12 }
  0x6d   :  { %1996 = vmatpush3.bf16.msra.mxu0 %v1961_v12  ;;  %v772_v12 = vld [vmem:[%s3082_s1 + $0x588] sm:$0xff] }
  0x6e   :  { %1998 = vmatprep.subr.bf16.mxu0 %v1965_v15  ;;  %v2017_v14 = vpack.c.bf16 %v772_v12, %v771_v11 }
  0x70   :  { %2018 = vmatprep.subr.bf16.mxu1 %v2017_v14 }
  0x71   :  { %2000 = vmatpush3.bf16.msra.mxu0 %v1965_v15  ;;  %v774_v15 = vld [vmem:[%s3082_s1 + $0x598] sm:$0xff] }
  0x72   :  { %2002 = vmatprep.subr.bf16.mxu0 %v1969_v18  ;;  %v2021_v16 = vpack.c.bf16 %v774_v15, %v773_v13 }
  0x75   :  { %2004 = vmatpush3.bf16.msra.mxu0 %v1969_v18  ;;  %v776_v18 = vld [vmem:[%s3082_s1 + $0x5a8] sm:$0xff] }
  0x76   :  { %2006 = vmatprep.subr.bf16.mxu0 %v1973_v21  ;;  %v2025_v19 = vpack.c.bf16 %v776_v18, %v775_v17 }
  0x79   :  { %2008 = vmatpush3.bf16.msra.mxu0 %v1973_v21 }
  0x7a   :  { %2010 = vmatprep.subr.bf16.mxu0 %v1977_v24 }
  0x7d   :  { %2012 = vmatpush3.bf16.msra.mxu0 %v1977_v24 }
  0x7e   :  { %2014 = vmatprep.subr.bf16.mxu0 %v1981_v27 }
  0x81   :  { %2016 = vmatpush3.bf16.msra.mxu0 %v1981_v27  ;;  %v778_v27 = vld [vmem:[%s3082_s1 + $0x5b8] sm:$0xff] }
  0x82   :  { %v2029_v28 = vpack.c.bf16 %v778_v27, %v777_v26  ;;  %v1051_v26 = vld [vmem:[%s3082_s1 + $0x698] sm:$0xff] }
  0xf7   :  { %v1282_v32 = vpop.f32.mrb[0].mxu0 }
  0xf8   :  { %v1283_v34 = vpop.f32.mrb[1].mxu0 }
  0xf9   :  { %v1320_v35 = vpop.f32.mrb[0].mxu1  ;;  %v1284_v36 = vadd.f32 %v1283_v34, %v1282_v32  ;;  %v780_v32 = vld [vmem:[%s3082_s1 + $0x5c8] sm:$0xff]  ;;  %v781_v34 = vld [vmem:[%s3082_s1 + $0x5d0] sm:$0xff] }
  0xfa   :  { %v1321_v37 = vpop.f32.mrb[1].mxu1 }
  0xfb   :  { %v1322_v38 = vadd.f32 %v1321_v37, %v1320_v35  ;;  %v277_v39 = vadd.f32 %v1284_v36, %v207_v33  ;;  %v1285_v42 = vpop.f32.mrb[2].mxu0  ;;  %v2033_v33 = vpack.c.bf16 %v780_v32, %v779_v30  ;;  %v782_v35 = vld [vmem:[%s3082_s1 + $0x5d8] sm:$0xff]  ;;  %v783_v37 = vld [vmem:[%s3082_s1 + $0x5e0] sm:$0xff]  ;;  %v1053_v30 = vld [vmem:[%s3082_s1 + $0x6a8] sm:$0xff] }
  0xfc   :  { %v1286_v44 = vpop.f32.mrb[3].mxu0  ;;  %v2037_v36 = vpack.c.bf16 %v782_v35, %v781_v34 }
  0xfd   :  { %v352_v41 = vadd.f32 %v1322_v38, %v277_v39  ;;  %v1323_v45 = vpop.f32.mrb[2].mxu1  ;;  %v1287_v46 = vadd.f32 %v1286_v44, %v1285_v42  ;;  %v784_v38 = vld [vmem:[%s3082_s1 + $0x5e8] sm:$0xff] }
  0xfe   :  { %v1324_v47 = vpop.f32.mrb[3].mxu1  ;;  %v2041_v39 = vpack.c.bf16 %v784_v38, %v783_v37  ;;  %v863_v44 = vld [vmem:[%s3082_s1 + $0x608] sm:$0xff] }
  0xff   :  { %v1325_v48 = vadd.f32 %v1324_v47, %v1323_v45  ;;  %v282_v49 = vadd.f32 %v1287_v46, %v203_v43  ;;  %v862_v43 = vld [vmem:[%s3082_s1 + $0x600] sm:$0xff]  ;;  %v864_v45 = vld [vmem:[%s3082_s1 + $0x610] sm:$0xff]  ;;  %v865_v47 = vld [vmem:[%s3082_s1 + $0x618] sm:$0xff] }
 0x100   :  { %v2049_v46 = vpack.c.bf16 %v863_v44, %v862_v43  ;;  %v1057_v43 = vld [vmem:[%s3082_s1 + $0x6c8] sm:$0xff] }
 0x101   :  { %v357_v50 = vadd.f32 %v1325_v48, %v282_v49  ;;  %v2053_v48 = vpack.c.bf16 %v865_v47, %v864_v45  ;;  %v866_v49 = vld [vmem:[%s3082_s1 + $0x620] sm:$0xff]  ;;  %v1058_v45 = vld [vmem:[%s3082_s1 + $0x6d0] sm:$0xff] }
 0x102   :  { %2050 = vmatprep.subr.bf16.mxu0 %v2049_v46 }
 0x117   :  { %v1358_v51 = vpop.f32.mrb[4].mxu0 }
 0x118   :  { %v1359_v52 = vpop.f32.mrb[5].mxu0 }
 0x119   :  { %v1396_v53 = vpop.f32.mrb[4].mxu1  ;;  %v1360_v54 = vadd.f32 %v1359_v52, %v1358_v51  ;;  %v868_v52 = vld [vmem:[%s3082_s1 + $0x630] sm:$0xff] }
 0x11a   :  { %v1397_v55 = vpop.f32.mrb[5].mxu1 }
 0x11b   :  { %v1398_v56 = vadd.f32 %v1397_v55, %v1396_v53  ;;  %v427_v57 = vadd.f32 %v1360_v54, %v352_v41  ;;  %v1361_v58 = vpop.f32.mrb[6].mxu0  ;;  %v786_v41 = vld [vmem:[%s3082_s1 + $0x5f8] sm:$0xff]  ;;  %v870_v55 = vld [vmem:[%s3082_s1 + $0x640] sm:$0xff] }
 0x11c   :  { %v1362_v59 = vpop.f32.mrb[7].mxu0  ;;  %v2045_v42 = vpack.c.bf16 %v786_v41, %v785_v40  ;;  %v869_v53 = vld [vmem:[%s3082_s1 + $0x638] sm:$0xff] }
 0x11d   :  { %v1399_v60 = vpop.f32.mrb[6].mxu1  ;;  %v502_v61 = vadd.f32 %v1398_v56, %v427_v57  ;;  %v1363_v62 = vadd.f32 %v1362_v59, %v1361_v58  ;;  %v2061_v54 = vpack.c.bf16 %v869_v53, %v868_v52  ;;  %v871_v56 = vld [vmem:[%s3082_s1 + $0x648] sm:$0xff]  ;;  %v872_v58 = vld [vmem:[%s3082_s1 + $0x650] sm:$0xff]  ;;  %v873_v59 = vld [vmem:[%s3082_s1 + $0x658] sm:$0xff] }
 0x11e   :  { %v1400_v63 = vpop.f32.mrb[7].mxu1  ;;  %v2065_v57 = vpack.c.bf16 %v871_v56, %v870_v55  ;;  %v1055_v40 = vld [vmem:[%s3082_s1 + $0x6b8] sm:$0xff]  ;;  %v1155_v55 = vld [vmem:[%s3082_s1 + $0x788] sm:$0xff]  ;;  %v1138_v56 = vld [vmem:[%s3082_s1 + $0x700] sm:$0xff] }
 0x11f   :  { %v1401_v0 = vadd.f32 %v1400_v63, %v1399_v60  ;;  %v432_v1 = vadd.f32 %v1363_v62, %v357_v50  ;;  %v867_v50 = vld [vmem:[%s3082_s1 + $0x628] sm:$0xff]  ;;  %v2069_v60 = vpack.c.bf16 %v873_v59, %v872_v58  ;;  %v1063_v52 = vld [vmem:[%s3082_s1 + $0x6f8] sm:$0xff]  ;;  %v1156_v59 = vld [vmem:[%s3082_s1 + $0x790] sm:$0xff] }
 0x120   :  { %v2057_v51 = vpack.c.bf16 %v867_v50, %v866_v49  ;;  %v875_v62 = vld [vmem:[%s3082_s1 + $0x668] sm:$0xff] }
 0x121   :  { %v507_v2 = vadd.f32 %v1401_v0, %v432_v1  ;;  %v876_v0 = vld [vmem:[%s3082_s1 + $0x670] sm:$0xff]  ;;  %v877_v1 = vld [vmem:[%s3082_s1 + $0x678] sm:$0xff]  ;;  %v1061_v49 = vld [vmem:[%s3082_s1 + $0x6e8] sm:$0xff] }
 0x122   :  { %v1139_v58 = vld [vmem:[%s3082_s1 + $0x708] sm:$0xff] }
 0x137   :  { %v1434_v3 = vpop.f32.mrb[8].mxu0 }
 0x138   :  { %v1435_v4 = vpop.f32.mrb[9].mxu0 }
 0x139   :  { %v1436_v5 = vadd.f32 %v1435_v4, %v1434_v3 }
 0x13b   :  { %v577_v6 = vadd.f32 %v1436_v5, %v502_v61  ;;  %v1437_v7 = vpop.f32.mrb[10].mxu0  ;;  %v874_v61 = vld [vmem:[%s3082_s1 + $0x660] sm:$0xff] }
 0x13c   :  { %v1438_v8 = vpop.f32.mrb[11].mxu0  ;;  %v2073_v63 = vpack.c.bf16 %v875_v62, %v874_v61  ;;  %v2147_v61 = vpack.c.bf16 %v1139_v58, %v1138_v56 }
 0x13d   :  { %v1439_v9 = vadd.f32 %v1438_v8, %v1437_v7  ;;  %1615 = vmatprep.mubr.f32.mxu1 %v577_v6  ;;  %v761_v7 = vsub.s32 2, %v2793_v29  ;;  %v767_v8 = vsub.s32 3, %v2793_v29 }
 0x13f   :  { %v2804_v10 = vadd.f32 %v1439_v9, %v507_v2  ;;  %v2077_v2 = vpack.c.bf16 %v877_v1, %v876_v0  ;;  %v762_v9 = vrot.slane %v2799_v31, %v761_v7  ;;  %v768_v15 = vrot.slane %v2799_v31, %v767_v8  ;;  %v1141_v0 = vld [vmem:[%s3082_s1 + $0x718] sm:$0xff]  ;;  %v1158_v1 = vld [vmem:[%s3082_s1 + $0x7a0] sm:$0xff]  ;;  %v1160_v7 = vld [vmem:[%s3082_s1 + $0x7b0] sm:$0xff] }
 0x140   :  { %v1161_v8 = vld [vmem:[%s3082_s1 + $0x7b8] sm:$0xff] }
 0x141   :  { %1616 = vmatmul.mubr.f32.vlgmr.msra.gmra.mrb[8].mxu1 %v2804_v10 }
 0x142   :  { %2020 = vmatpush3.bf16.msra.mxu1 %v2017_v14 }
 0x143   :  { %2022 = vmatprep.subr.bf16.mxu1 %v2021_v16 }
 0x146   :  { %2024 = vmatpush3.bf16.msra.mxu1 %v2021_v16 }
 0x147   :  { %2026 = vmatprep.subr.bf16.mxu1 %v2025_v19 }
 0x14a   :  { %2028 = vmatpush3.bf16.msra.mxu1 %v2025_v19 }
 0x14b   :  { %2030 = vmatprep.subr.bf16.mxu1 %v2029_v28 }
 0x14e   :  { %2032 = vmatpush3.bf16.msra.mxu1 %v2029_v28  ;;  %v1052_v28 = vld [vmem:[%s3082_s1 + $0x6a0] sm:$0xff] }
 0x14f   :  { %2034 = vmatprep.subr.bf16.mxu1 %v2033_v33  ;;  %v2121_v32 = vpack.c.bf16 %v1053_v30, %v1052_v28 }
 0x152   :  { %2036 = vmatpush3.bf16.msra.mxu1 %v2033_v33 }
 0x153   :  { %2038 = vmatprep.subr.bf16.mxu1 %v2037_v36 }
 0x156   :  { %2040 = vmatpush3.bf16.msra.mxu1 %v2037_v36 }
 0x157   :  { %2042 = vmatprep.subr.bf16.mxu1 %v2041_v39 }
 0x15a   :  { %2044 = vmatpush3.bf16.msra.mxu1 %v2041_v39  ;;  %v1054_v39 = vld [vmem:[%s3082_s1 + $0x6b0] sm:$0xff] }
 0x15b   :  { %2046 = vmatprep.subr.bf16.mxu1 %v2045_v42  ;;  %v2125_v41 = vpack.c.bf16 %v1055_v40, %v1054_v39  ;;  %v1152_v40 = vld [vmem:[%s3082_s1 + $0x770] sm:$0xff] }
 0x15e   :  { %2048 = vmatpush3.bf16.msra.mxu1 %v2045_v42  ;;  %v1056_v42 = vld [vmem:[%s3082_s1 + $0x6c0] sm:$0xff] }
 0x15f   :  { %2082 = vmatprep.subr.bf16.mxu1 %v2049_v46  ;;  %v2129_v44 = vpack.c.bf16 %v1057_v43, %v1056_v42 }
 0x214   :  { %v1617_v20 = vpop.f32.mrb[8].mxu1 }
 0x215   :  { %v2826_v21 = vsub.f32 %v2804_v10, %v1617_v20  ;;  %v667_v22 = vpop.f32.mrb[9].mxu1 }
 0x216   :  { %v2828_v23 = vsub.f32 %v577_v6, %v667_v22  ;;  %v1048_v22 = vld [vmem:[%s3082_s1 + $0x680] sm:$0xff] }
 0x217   :  { %v679_v25 = vmul.f32 %v2826_v21, %v2826_v21 }
 0x218   :  { %v678_v24 = vmul.f32 %v2828_v23, %v2828_v23 }
 0x21a   :  { %1650 = vmatprep.mubr.f32.mxu0 %v678_v24  ;;  %v1050_v24 = vld [vmem:[%s3082_s1 + $0x690] sm:$0xff] }
 0x21b   :  { %1651 = vmatmul.mubr.f32.vlgmr.msra.gmra.mrb[12].mxu0 %v679_v25  ;;  %v2117_v27 = vpack.c.bf16 %v1051_v26, %v1050_v24  ;;  %v1148_v24 = vld [vmem:[%s3082_s1 + $0x750] sm:$0xff]  ;;  %v1166_v26 = vld [vmem:[%s3082_s1 + $0x7e0] sm:$0xff] }
 0x21c   :  { %2052 = vmatpush3.bf16.msra.mxu0 %v2049_v46 }
 0x21d   :  { %2054 = vmatprep.subr.bf16.mxu0 %v2053_v48 }
 0x220   :  { %2056 = vmatpush3.bf16.msra.mxu0 %v2053_v48 }
 0x221   :  { %2058 = vmatprep.subr.bf16.mxu0 %v2057_v51 }
 0x224   :  { %2060 = vmatpush3.bf16.msra.mxu0 %v2057_v51 }
 0x225   :  { %2062 = vmatprep.subr.bf16.mxu0 %v2061_v54 }
 0x228   :  { %2064 = vmatpush3.bf16.msra.mxu0 %v2061_v54 }
 0x229   :  { %2066 = vmatprep.subr.bf16.mxu0 %v2065_v57 }
 0x22c   :  { %2068 = vmatpush3.bf16.msra.mxu0 %v2065_v57 }
 0x22d   :  { %2070 = vmatprep.subr.bf16.mxu0 %v2069_v60 }
 0x230   :  { %2072 = vmatpush3.bf16.msra.mxu0 %v2069_v60 }
 0x231   :  { %2074 = vmatprep.subr.bf16.mxu0 %v2073_v63 }
 0x234   :  { %2076 = vmatpush3.bf16.msra.mxu0 %v2073_v63 }
 0x235   :  { %2078 = vmatprep.subr.bf16.mxu0 %v2077_v2 }
 0x238   :  { %2080 = vmatpush3.bf16.msra.mxu0 %v2077_v2 }
 0x2ee   :  { %v1652_v3 = vpop.f32.mrb[12].mxu0 }
 0x2ef   :  { %v752_v4 = vadd.f32 1e-05, %v1652_v3  ;;  %v746_v5 = vpop.f32.mrb[13].mxu0 }
 0x2f0   :  { %v747_v6 = vadd.f32 1e-05, %v746_v5  ;;  %v1142_v5 = vld [vmem:[%s3082_s1 + $0x720] sm:$0xff] }
 0x2f1   :  { %2177 = vrsqrt.f32 %v752_v4 }
 0x2f2   :  { %2179 = vrsqrt.f32 %v747_v6  ;;  %v1143_v6 = vld [vmem:[%s3082_s1 + $0x728] sm:$0xff] }
 0x2fb   :  { %v2178_v11 = vpop.eup %2177 }
 0x2fc   :  { %v2180_v12 = vpop.eup %2179  ;;  %v758_v13 = vmul.f32 %v2178_v11, %v2826_v21  ;;  %v2157_v11 = vpack.c.bf16 %v1161_v8, %v1160_v7 }
 0x2fd   :  { %v757_v14 = vmul.f32 %v2180_v12, %v2828_v23  ;;  %v1049_v23 = vld [vmem:[%s3082_s1 + $0x688] sm:$0xff]  ;;  %v1144_v12 = vld [vmem:[%s3082_s1 + $0x730] sm:$0xff] }
 0x2fe   :  { %v764_v16 = vmul.f32 %v762_v9, %v758_v13  ;;  %v2113_v25 = vpack.c.bf16 %v1049_v23, %v1048_v22  ;;  %v1145_v13 = vld [vmem:[%s3082_s1 + $0x738] sm:$0xff] }
 0x2ff   :  { %v763_v17 = vmul.f32 %v762_v9, %v757_v14  ;;  %v2155_v9 = vpack.c.bf16 %v1143_v6, %v1142_v5  ;;  %v1162_v14 = vld [vmem:[%s3082_s1 + $0x7c0] sm:$0xff] }
 0x300   :  { %v770_v19 = vadd.f32 %v768_v15, %v764_v16  ;;  %2114 = vmatprep.subr.bf16.mxu0 %v2113_v25  ;;  %v2159_v16 = vpack.c.bf16 %v1145_v13, %v1144_v12 }
 0x301   :  { %v769_v18 = vadd.f32 %v768_v15, %v763_v17  ;;  %v1163_v15 = vld [vmem:[%s3082_s1 + $0x7c8] sm:$0xff] }
 0x302   :  { %v2161_v17 = vpack.c.bf16 %v1163_v15, %v1162_v14 }
 0x303   :  { %1685 = vmatprep.mubr.f32.mxu1 %v769_v18  ;;  %v1146_v18 = vld [vmem:[%s3082_s1 + $0x740] sm:$0xff] }
 0x304   :  { %1686 = vmatmul.mubr.f32.vlgmr.msra.gmra.mrb[10].mxu1 %v770_v19  ;;  %v1147_v19 = vld [vmem:[%s3082_s1 + $0x748] sm:$0xff] }
 0x305   :  { %2084 = vmatpush3.bf16.msra.mxu1 %v2049_v46  ;;  %v1059_v46 = vld [vmem:[%s3082_s1 + $0x6d8] sm:$0xff]  ;;  %v2163_v22 = vpack.c.bf16 %v1147_v19, %v1146_v18 }
 0x306   :  { %2086 = vmatprep.subr.bf16.mxu1 %v2053_v48  ;;  %v2133_v47 = vpack.c.bf16 %v1059_v46, %v1058_v45 }
 0x309   :  { %2088 = vmatpush3.bf16.msra.mxu1 %v2053_v48  ;;  %v1060_v48 = vld [vmem:[%s3082_s1 + $0x6e0] sm:$0xff] }
 0x30a   :  { %2090 = vmatprep.subr.bf16.mxu1 %v2057_v51  ;;  %v2137_v50 = vpack.c.bf16 %v1061_v49, %v1060_v48  ;;  %v1044_v48 = vsub.s32 5, %v2793_v29 }
 0x30d   :  { %2092 = vmatpush3.bf16.msra.mxu1 %v2057_v51  ;;  %v1062_v51 = vld [vmem:[%s3082_s1 + $0x6f0] sm:$0xff] }
 0x30e   :  { %2094 = vmatprep.subr.bf16.mxu1 %v2061_v54  ;;  %v2141_v53 = vpack.c.bf16 %v1063_v52, %v1062_v51 }
 0x311   :  { %2096 = vmatpush3.bf16.msra.mxu1 %v2061_v54  ;;  %v1154_v54 = vld [vmem:[%s3082_s1 + $0x780] sm:$0xff] }
 0x312   :  { %2098 = vmatprep.subr.bf16.mxu1 %v2065_v57 }
 0x315   :  { %2100 = vmatpush3.bf16.msra.mxu1 %v2065_v57  ;;  %v2145_v57 = vpack.c.bf16 %v1155_v55, %v1154_v54  ;;  %v1045_v54 = vrot.slane %v2799_v31, %v1044_v48 }
 0x316   :  { %2102 = vmatprep.subr.bf16.mxu1 %v2069_v60 }
 0x319   :  { %2104 = vmatpush3.bf16.msra.mxu1 %v2069_v60  ;;  %v1157_v60 = vld [vmem:[%s3082_s1 + $0x798] sm:$0xff] }
 0x31a   :  { %2106 = vmatprep.subr.bf16.mxu1 %v2073_v63  ;;  %v2149_v62 = vpack.c.bf16 %v1157_v60, %v1156_v59 }
 0x31d   :  { %2108 = vmatpush3.bf16.msra.mxu1 %v2073_v63  ;;  %v1140_v63 = vld [vmem:[%s3082_s1 + $0x710] sm:$0xff] }
 0x31e   :  { %2110 = vmatprep.subr.bf16.mxu1 %v2077_v2  ;;  %v2151_v3 = vpack.c.bf16 %v1141_v0, %v1140_v63 }
 0x321   :  { %2112 = vmatpush3.bf16.msra.mxu1 %v2077_v2  ;;  %v1159_v2 = vld [vmem:[%s3082_s1 + $0x7a8] sm:$0xff] }
 0x322   :  { %2146 = vmatprep.subr.bf16.mxu1 %v2145_v57  ;;  %v2153_v4 = vpack.c.bf16 %v1159_v2, %v1158_v1 }
 0x3d7   :  { %v1687_v20 = vpop.f32.mrb[10].mxu1 }
 0x3d8   :  { %v853_v21 = vpop.f32.mrb[11].mxu1 }
 0x3d9   :  { %1720 = vmatprep.mubr.f32.mxu0 %v853_v21 }
 0x3da   :  { %1721 = vmatmul.mubr.f32.vlgmr.msra.gmra.mrb[14].mxu0 %v1687_v20 }
 0x3db   :  { %2116 = vmatpush3.bf16.msra.mxu0 %v2113_v25  ;;  %v1149_v25 = vld [vmem:[%s3082_s1 + $0x758] sm:$0xff] }
 0x3dc   :  { %2118 = vmatprep.subr.bf16.mxu0 %v2117_v27  ;;  %v2167_v28 = vpack.c.bf16 %v1149_v25, %v1148_v24 }
 0x3df   :  { %2120 = vmatpush3.bf16.msra.mxu0 %v2117_v27  ;;  %v1167_v27 = vld [vmem:[%s3082_s1 + $0x7e8] sm:$0xff] }
 0x3e0   :  { %2122 = vmatprep.subr.bf16.mxu0 %v2121_v32  ;;  %v2169_v30 = vpack.c.bf16 %v1167_v27, %v1166_v26 }
 0x3e3   :  { %2124 = vmatpush3.bf16.msra.mxu0 %v2121_v32  ;;  %v1150_v32 = vld [vmem:[%s3082_s1 + $0x760] sm:$0xff] }
 0x3e4   :  { %2126 = vmatprep.subr.bf16.mxu0 %v2125_v41 }
 0x3e7   :  { %2128 = vmatpush3.bf16.msra.mxu0 %v2125_v41  ;;  %v1153_v41 = vld [vmem:[%s3082_s1 + $0x778] sm:$0xff] }
 0x3e8   :  { %2130 = vmatprep.subr.bf16.mxu0 %v2129_v44  ;;  %v2175_v42 = vpack.c.bf16 %v1153_v41, %v1152_v40 }
 0x3eb   :  { %2132 = vmatpush3.bf16.msra.mxu0 %v2129_v44 }
 0x3ec   :  { %2134 = vmatprep.subr.bf16.mxu0 %v2133_v47 }
 0x3ef   :  { %2136 = vmatpush3.bf16.msra.mxu0 %v2133_v47  ;;  %v1038_v47 = vsub.s32 4, %v2793_v29 }
 0x3f0   :  { %2138 = vmatprep.subr.bf16.mxu0 %v2137_v50 }
 0x3f1   :  { %v1039_v49 = vrot.slane %v2799_v31, %v1038_v47 }
 0x3f3   :  { %2140 = vmatpush3.bf16.msra.mxu0 %v2137_v50 }
 0x3f4   :  { %2142 = vmatprep.subr.bf16.mxu0 %v2141_v53 }
 0x3f7   :  { %2144 = vmatpush3.bf16.msra.mxu0 %v2141_v53 }
 0x4ad   :  { %v1722_v33 = vpop.f32.mrb[14].mxu0 }
 0x4ae   :  { %v2936_v34 = vsub.f32 %v1687_v20, %v1722_v33  ;;  %v944_v35 = vpop.f32.mrb[15].mxu0  ;;  %v1164_v20 = vld [vmem:[%s3082_s1 + $0x7d0] sm:$0xff]  ;;  %v1151_v33 = vld [vmem:[%s3082_s1 + $0x768] sm:$0xff] }
 0x4af   :  { %v2938_v36 = vsub.f32 %v853_v21, %v944_v35  ;;  %v1165_v21 = vld [vmem:[%s3082_s1 + $0x7d8] sm:$0xff]  ;;  %v1168_v35 = vld [vmem:[%s3082_s1 + $0x7f0] sm:$0xff] }
 0x4b0   :  { %v956_v38 = vmul.f32 %v2936_v34, %v2936_v34  ;;  %v2165_v23 = vpack.c.bf16 %v1165_v21, %v1164_v20 }
 0x4b1   :  { %v955_v37 = vmul.f32 %v2938_v36, %v2938_v36 }
 0x4b3   :  { %1755 = vmatprep.mubr.f32.mxu1 %v955_v37  ;;  %v1169_v37 = vld [vmem:[%s3082_s1 + $0x7f8] sm:$0xff] }
 0x4b4   :  { %1756 = vmatmul.mubr.f32.vlgmr.msra.gmra.mrb[12].mxu1 %v956_v38  ;;  %v2171_v38 = vpack.c.bf16 %v1151_v33, %v1150_v32  ;;  %v2173_v39 = vpack.c.bf16 %v1169_v37, %v1168_v35 }
 0x4b5   :  { %2148 = vmatpush3.bf16.msra.mxu1 %v2147_v61  ;;  %v1172_v61 = vsub.s32 6, %v2793_v29 }
 0x4b6   :  { %2150 = vmatprep.subr.bf16.mxu1 %v2149_v62 }
 0x4b9   :  { %2152 = vmatpush3.bf16.msra.mxu1 %v2151_v3 }
 0x4ba   :  { %2154 = vmatprep.subr.bf16.mxu1 %v2153_v4 }
 0x4bd   :  { %2156 = vmatpush3.bf16.msra.mxu1 %v2155_v9 }
 0x4be   :  { %2158 = vmatprep.subr.bf16.mxu1 %v2157_v11 }
 0x4c1   :  { %2160 = vmatpush3.bf16.msra.mxu1 %v2159_v16 }
 0x4c2   :  { %2162 = vmatprep.subr.bf16.mxu1 %v2161_v17 }
 0x4c5   :  { %2164 = vmatpush3.bf16.msra.mxu1 %v2163_v22 }
 0x4c6   :  { %2166 = vmatprep.subr.bf16.mxu1 %v2165_v23 }
 0x4c9   :  { %2168 = vmatpush3.bf16.msra.mxu1 %v2167_v28 }
 0x4ca   :  { %2170 = vmatprep.subr.bf16.mxu1 %v2169_v30 }
 0x4cd   :  { %2172 = vmatpush3.bf16.msra.mxu1 %v2171_v38 }
 0x4ce   :  { %2174 = vmatprep.subr.bf16.mxu1 %v2173_v39 }
 0x4d1   :  { %2176 = vmatpush3.bf16.msra.mxu1 %v2175_v42 }
 0x587   :  { %v1757_v43 = vpop.f32.mrb[12].mxu1 }
 0x588   :  { %v1029_v44 = vadd.f32 1e-05, %v1757_v43  ;;  %v1023_v45 = vpop.f32.mrb[13].mxu1 }
 0x589   :  { %v1024_v46 = vadd.f32 1e-05, %v1023_v45 }
 0x58a   :  { %2181 = vrsqrt.f32 %v1029_v44 }
 0x58b   :  { %2183 = vrsqrt.f32 %v1024_v46 }
 0x594   :  { %v2182_v50 = vpop.eup %2181 }
 0x595   :  { %v2184_v51 = vpop.eup %2183  ;;  %v1035_v52 = vmul.f32 %v2182_v50, %v2936_v34  ;;  %v1173_v34 = vrot.slane %v2799_v31, %v1172_v61 }
 0x596   :  { %v1034_v53 = vmul.f32 %v2184_v51, %v2938_v36 }
 0x597   :  { %v1041_v55 = vmul.f32 %v1039_v49, %v1035_v52 }
 0x598   :  { %v1040_v56 = vmul.f32 %v1039_v49, %v1034_v53 }
 0x599   :  { %v1047_v58 = vadd.f32 %v1045_v54, %v1041_v55 }
 0x59a   :  { %v1046_v57 = vadd.f32 %v1045_v54, %v1040_v56 }
 0x59c   :  { %1790 = vmatprep.mubr.f32.mxu0 %v1046_v57 }
 0x59d   :  { %1791 = vmatmul.mubr.f32.vlgmr.msra.gmra.mrb[16].mxu0 %v1047_v58 }
 0x670   :  { %v1792_v59 = vpop.f32.mrb[16].mxu0 }
 0x671   :  { %v1130_v60 = vpop.f32.mrb[17].mxu0  ;;  %1238 = vmatprep.mubr.f32.mxu1 %v1792_v59 }
 0x672   :  { %1239 = vmatmul.mubr.f32.vlgmr.msra.gmra.mrb[14].mxu1 %v2804_v10 }
 0x745   :  { %v1580_v62 = vpop.f32.mrb[14].mxu1 }
 0x746   :  { %v1581_v63 = vpop.f32.mrb[15].mxu1 }
 0x747   :  { %v1582_v36 = vadd.f32 %v1581_v63, %v1580_v62 }
 0x749   :  { %v1241_v0 = vadd.f32 %v1582_v36, %v1173_v34 }
 0x74b   :  { %v1244_v1 = vmax.f32 %v1241_v0, 0.0 }
 0x74d   :  { %1245 = vst [vmem:[%s3085_s3] sm:$0xf] %v1244_v1 }

</bundles_post_ra>
